<compile_context>
chip_gen: v7x
topology: tpu7x:2x2x1
jax: 0.10.0
libtpu: 0.0.40
codegen_flags: <defaults>
</compile_context>

<pallas_src>
import jax
import jax.numpy as jnp
import numpy as np
from jax.experimental import pallas as pl
from jax.experimental.pallas import tpu as pltpu

CP = 128  # lane width: every channel dim is zero-padded to this inside the kernel
_VMEM = pl.BlockSpec(memory_space=pltpu.MemorySpace.VMEM)


# ------------------------------ Pallas kernel -------------------------------

def _encoder_kernel(
    patches_ref, stem_w_ref, stem_b_ref, bn1_s_ref, bn1_t_ref,
    blk_w1_ref, blk_b1_ref, blk_w2_ref, blk_b2_ref,
    head_w_ref, head_b_ref, bn2_s_ref, bn2_t_ref,
    cls_w_ref, cls_b_ref, pool_ref,
    stem_out_ref, bn1_out_ref, blk0_out_ref, blk1_out_ref,
    head_out_ref, bn2_out_ref, gap_out_ref, cls_out_ref,
):
    """Whole Encoder_EffNet forward; all activations stay in VMEM/vregs."""

    def silu(y):
        # exp + approx reciprocal both go to the EUP slot (VALU stays free).
        return y * pl.reciprocal(1.0 + jnp.exp(-y), approx=True)

    # ---- conv_stem: 3x3 / stride-2 / pad-1 conv as ONE im2col matmul ----
    # patches[m, t*cin + c] == xpad[b, 2r+i, 2c+j, c] with t = 3*i + j and
    # m the flattened (b, r, c) row; weights are packed to match.
    stem = (jnp.dot(patches_ref[...], stem_w_ref[...],
                    preferred_element_type=jnp.float32) + stem_b_ref[...])
    stem_out_ref[...] = stem

    # ---- bn1 (+ SiLU), BN folded to scale/shift ----
    cur = silu(stem * bn1_s_ref[...] + bn1_t_ref[...])
    bn1_out_ref[...] = cur

    # ---- blocks: 1x1 expand + SiLU, 1x1 project + residual (expanded tensor
    #      never leaves VMEM) ----
    for k, blk_out_ref in enumerate((blk0_out_ref, blk1_out_ref)):
        exp = silu(jnp.dot(cur.astype(jnp.bfloat16), blk_w1_ref[k],
                           preferred_element_type=jnp.float32) + blk_b1_ref[k])
        cur = (jnp.dot(exp.astype(jnp.bfloat16), blk_w2_ref[k],
                       preferred_element_type=jnp.float32)
               + blk_b2_ref[k] + cur)
        blk_out_ref[...] = cur

    # ---- conv_head (1x1 conv) ----
    head = (jnp.dot(cur.astype(jnp.bfloat16), head_w_ref[...],
                    preferred_element_type=jnp.float32) + head_b_ref[...])
    head_out_ref[...] = head

    # ---- bn2 (+ SiLU) ----
    head_bn = silu(head * bn2_s_ref[...] + bn2_t_ref[...])
    bn2_out_ref[...] = head_bn

    # ---- global average pool as an MXU matmul: (B, M) @ (M, CP) ----
    pooled = jnp.dot(pool_ref[...], head_bn, preferred_element_type=jnp.float32)
    gap_out_ref[...] = pooled

    # ---- classifier (Linear) ----
    cls_out_ref[...] = (jnp.dot(pooled.astype(jnp.bfloat16), cls_w_ref[...],
                                preferred_element_type=jnp.float32)
                        + cls_b_ref[...])


# ------------------------------ param packing -------------------------------

def _fold_bn(gamma, beta, mean, var, eps=1e-5):
    scale = gamma / jnp.sqrt(var + eps)
    shift = beta - mean * scale
    return scale, shift


def _pad_mat(w):
    """[k, n] -> [CP, CP] zero-padded bf16 (MXU operand)."""
    return jnp.pad(w, ((0, CP - w.shape[0]), (0, CP - w.shape[1]))).astype(jnp.bfloat16)


def _pad_vec(v):
    """[n] -> [1, CP] zero-padded f32 (epilogue operand)."""
    return jnp.pad(v, (0, CP - v.shape[0])).reshape(1, CP).astype(jnp.float32)


def pack_params(p):
    """Fold BN, zero-pad every channel dim to CP lanes, cast matmul weights to bf16."""
    # NOTE: stem weight is stored (kh, kw, Cin, Cout).  If real PyTorch conv
    # weights (Cout, Cin, kh, kw) are ever loaded, permute to (kh, kw, Cin, Cout)
    # first or the stem output will be silently wrong.
    kh, kw, cin, cout = p["stem_w"].shape
    assert kh * kw * cin <= CP, "im2col K dim must fit in one 128-lane operand"
    stem_mat = p["stem_w"].reshape(kh * kw * cin, cout)   # k = (i*kw + j)*cin + c
    s1, t1 = _fold_bn(p["bn1_gamma"], p["bn1_beta"], p["bn1_mean"], p["bn1_var"])
    s2, t2 = _fold_bn(p["bn2_gamma"], p["bn2_beta"], p["bn2_mean"], p["bn2_var"])
    return {
        "stem_w": _pad_mat(stem_mat),
        "stem_b": _pad_vec(p["stem_b"]),
        "bn1_s": _pad_vec(s1), "bn1_t": _pad_vec(t1),
        "blk_w1": jnp.stack([_pad_mat(b["w1"]) for b in p["blocks"]]),
        "blk_b1": jnp.stack([_pad_vec(b["b1"]) for b in p["blocks"]]),
        "blk_w2": jnp.stack([_pad_mat(b["w2"]) for b in p["blocks"]]),
        "blk_b2": jnp.stack([_pad_vec(b["b2"]) for b in p["blocks"]]),
        "head_w": _pad_mat(p["head_w"]), "head_b": _pad_vec(p["head_b"]),
        "bn2_s": _pad_vec(s2), "bn2_t": _pad_vec(t2),
        "cls_w": _pad_mat(p["cls_w"]), "cls_b": _pad_vec(p["cls_b"]),
    }


def init_params(key, c_in=4, stem_ch=8, exp_ch=16, head_ch=16, num_classes=10):
    ks = jax.random.split(key, 16)
    n = lambda k, shape, s=0.1: (s * jax.random.normal(k, shape)).astype(jnp.float32)
    return {
        # conv_stem: 3x3 stride-2 conv weight in (kh, kw, Cin, Cout) layout
        "stem_w": n(ks[0], (3, 3, c_in, stem_ch)),
        "stem_b": n(ks[1], (stem_ch,)),
        # bn1 (BatchNormAct2d-style: BN + SiLU)
        "bn1_gamma": 1.0 + n(ks[2], (stem_ch,)),
        "bn1_beta": n(ks[3], (stem_ch,)),
        "bn1_mean": n(ks[4], (stem_ch,)),
        "bn1_var": 1.0 + jnp.abs(n(ks[5], (stem_ch,))),
        # blocks: 2 MBConv-lite blocks (1x1 expand + SiLU, 1x1 project, residual)
        "blocks": [
            {"w1": n(ks[6], (stem_ch, exp_ch)), "b1": n(ks[7], (exp_ch,)),
             "w2": n(ks[8], (exp_ch, stem_ch)), "b2": n(ks[9], (stem_ch,))},
            {"w1": n(ks[10], (stem_ch, exp_ch)), "b1": n(ks[11], (exp_ch,)),
             "w2": n(ks[12], (exp_ch, stem_ch)), "b2": n(ks[13], (stem_ch,))},
        ],
        # conv_head: 1x1 conv
        "head_w": n(ks[14], (stem_ch, head_ch)),
        "head_b": n(ks[15], (head_ch,)),
        # bn2 (+SiLU)
        "bn2_gamma": jnp.ones((head_ch,), jnp.float32),
        "bn2_beta": jnp.zeros((head_ch,), jnp.float32),
        "bn2_mean": jnp.zeros((head_ch,), jnp.float32),
        "bn2_var": jnp.ones((head_ch,), jnp.float32),
        # classifier
        "cls_w": n(jax.random.PRNGKey(123), (head_ch, num_classes)),
        "cls_b": jnp.zeros((num_classes,), jnp.float32),
    }


# -------------------------------- forward -----------------------------------

def encoder_effnet_forward(x_nchw, params):
    """Reproduces Encoder_EffNet.forward:
    returns [x, conv_stem, bn1, block0, block1, conv_head, bn2, global_pool, classifier]."""
    kp = pack_params(params)
    B, c_in, H, W = x_nchw.shape
    stem_ch = params["stem_w"].shape[-1]
    head_ch = params["head_w"].shape[-1]
    n_cls = params["cls_w"].shape[-1]
    HO, WO = H // 2, W // 2               # stem is 3x3 / stride 2 / pad 1
    M = B * HO * WO

    # NCHW -> NHWC, pad 1 row/col (conv pad=1), im2col ONLY the real channels
    # (9*c_in lanes), then zero-pad once to CP lanes.  This is smaller than the
    # channel-padded input, so HBM->VMEM traffic shrinks vs. per-tap matmuls.
    x = jnp.transpose(x_nchw, (0, 2, 3, 1)).astype(jnp.float32)
    xpad = jnp.pad(x, ((0, 0), (1, 1), (1, 1), (0, 0)))
    taps = [xpad[:, i:i + 2 * HO:2, j:j + 2 * WO:2, :]
            for i in range(3) for j in range(3)]            # 9 x (B,HO,WO,c_in)
    patches = jnp.stack(taps, axis=3).reshape(M, 9 * c_in)  # tap-major, matches weight
    patches = jnp.pad(patches, ((0, 0), (0, CP - 9 * c_in))).astype(jnp.bfloat16)

    # GAP as a matmul: pool_mat[b, m] = 1/(HO*WO) if flattened row m is in batch b.
    hw = HO * WO
    pool_mat = jnp.repeat(jnp.eye(B, dtype=jnp.float32), hw, axis=1) * (1.0 / hw)

    feat = jax.ShapeDtypeStruct((M, CP), jnp.float32)
    vec = jax.ShapeDtypeStruct((B, CP), jnp.float32)

    outs = pl.pallas_call(
        _encoder_kernel,
        out_shape=(feat, feat, feat, feat, feat, feat, vec, vec),
        in_specs=[_VMEM] * 16,
        out_specs=(_VMEM,) * 8,
    )(patches, kp["stem_w"], kp["stem_b"], kp["bn1_s"], kp["bn1_t"],
      kp["blk_w1"], kp["blk_b1"], kp["blk_w2"], kp["blk_b2"],
      kp["head_w"], kp["head_b"], kp["bn2_s"], kp["bn2_t"],
      kp["cls_w"], kp["cls_b"], pool_mat)

    stem2d, bn12d, b02d, b12d, head2d, bn22d, pooled, logits = outs

    # Deferred layout conversion: slice real channels + transpose once, at the end.
    def to_nchw(a2d, c):
        return jnp.transpose(a2d.reshape(B, HO, WO, CP)[..., :c], (0, 3, 1, 2))

    return [
        x_nchw,
        to_nchw(stem2d, stem_ch), to_nchw(bn12d, stem_ch),
        to_nchw(b02d, stem_ch), to_nchw(b12d, stem_ch),
        to_nchw(head2d, head_ch), to_nchw(bn22d, head_ch),
        pooled[:, :head_ch], logits[:, :n_cls],
    ]


# ------------------------- pure-JAX reference (check) ------------------------

def encoder_effnet_reference(x_nchw, p):
    x = jnp.transpose(x_nchw, (0, 2, 3, 1)).astype(jnp.float32)
    stem = jax.lax.conv_general_dilated(
        x, p["stem_w"], window_strides=(2, 2), padding=((1, 1), (1, 1)),
        dimension_numbers=("NHWC", "HWIO", "NHWC")) + p["stem_b"]

    def silu(y):
        return y * jax.nn.sigmoid(y)

    s1, t1 = _fold_bn(p["bn1_gamma"], p["bn1_beta"], p["bn1_mean"], p["bn1_var"])
    s2, t2 = _fold_bn(p["bn2_gamma"], p["bn2_beta"], p["bn2_mean"], p["bn2_var"])
    bn1 = silu(stem * s1 + t1)
    cur, blks = bn1, []
    for b in p["blocks"]:
        e = silu(cur @ b["w1"] + b["b1"])
        cur = e @ b["w2"] + b["b2"] + cur
        blks.append(cur)
    head = cur @ p["head_w"] + p["head_b"]
    bn2 = silu(head * s2 + t2)
    pooled = bn2.mean(axis=(1, 2))
    logits = pooled @ p["cls_w"] + p["cls_b"]
    nchw = lambda a: jnp.transpose(a, (0, 3, 1, 2))
    return [x_nchw, nchw(stem), nchw(bn1), nchw(blks[0]), nchw(blks[1]),
            nchw(head), nchw(bn2), pooled, logits]


if __name__ == "__main__":
    key = jax.random.PRNGKey(0)
    kx, kprm = jax.random.split(key)
    x = jax.random.normal(kx, (2, 4, 16, 16), dtype=jnp.float32)   # NCHW like PyTorch
    params = init_params(kprm)

    fwd = jax.jit(encoder_effnet_forward)
    feats = jax.block_until_ready(fwd(x, params))

    # x, conv_stem, bn1, block0, block1, conv_head, bn2, global_pool, classifier
    assert len(feats) == 9
    assert feats[0].shape == (2, 4, 16, 16)
    assert feats[1].shape == (2, 8, 8, 8)       # stem: stride-2 conv
    assert feats[2].shape == (2, 8, 8, 8)       # bn1
    assert feats[3].shape == (2, 8, 8, 8)       # block 0
    assert feats[4].shape == (2, 8, 8, 8)       # block 1
    assert feats[5].shape == (2, 16, 8, 8)      # conv_head
    assert feats[6].shape == (2, 16, 8, 8)      # bn2
    assert feats[7].shape == (2, 16)            # global pool
    assert feats[8].shape == (2, 10)            # classifier logits

    # Numerical check against a pure-JAX reference (bf16 matmuls + approx
    # reciprocal in the kernel -> loose tolerance).
    ref = encoder_effnet_reference(x, params)
    for i, (a, b) in enumerate(zip(feats, ref)):
        err = float(jnp.max(jnp.abs(jnp.asarray(a) - jnp.asarray(b))))
        assert np.isfinite(err) and err < 5e-2, f"feature {i} max abs err {err}"

    print("KERNEL_OK")
</pallas_src>

<mosaic_0001>
module attributes {stable_mosaic.version = 11 : i64} {
  func.func @_encoder_kernel(%arg0: memref<128x128xbf16, #tpu.memory_space<vmem>>, %arg1: memref<128x128xbf16, #tpu.memory_space<vmem>>, %arg2: memref<1x128xf32, #tpu.memory_space<vmem>>, %arg3: memref<1x128xf32, #tpu.memory_space<vmem>>, %arg4: memref<1x128xf32, #tpu.memory_space<vmem>>, %arg5: memref<2x128x128xbf16, #tpu.memory_space<vmem>>, %arg6: memref<2x1x128xf32, #tpu.memory_space<vmem>>, %arg7: memref<2x128x128xbf16, #tpu.memory_space<vmem>>, %arg8: memref<2x1x128xf32, #tpu.memory_space<vmem>>, %arg9: memref<128x128xbf16, #tpu.memory_space<vmem>>, %arg10: memref<1x128xf32, #tpu.memory_space<vmem>>, %arg11: memref<1x128xf32, #tpu.memory_space<vmem>>, %arg12: memref<1x128xf32, #tpu.memory_space<vmem>>, %arg13: memref<128x128xbf16, #tpu.memory_space<vmem>>, %arg14: memref<1x128xf32, #tpu.memory_space<vmem>>, %arg15: memref<2x128xf32, #tpu.memory_space<vmem>>, %arg16: memref<128x128xf32, #tpu.memory_space<vmem>>, %arg17: memref<128x128xf32, #tpu.memory_space<vmem>>, %arg18: memref<128x128xf32, #tpu.memory_space<vmem>>, %arg19: memref<128x128xf32, #tpu.memory_space<vmem>>, %arg20: memref<128x128xf32, #tpu.memory_space<vmem>>, %arg21: memref<128x128xf32, #tpu.memory_space<vmem>>, %arg22: memref<2x128xf32, #tpu.memory_space<vmem>>, %arg23: memref<2x128xf32, #tpu.memory_space<vmem>>) attributes {dimension_semantics = [], scalar_prefetch = 0 : i64, scratch_operands = 0 : i64, tpu.core_type = #tpu.core_type<tc>} {
    %c0 = arith.constant 0 : index
    %c0_0 = arith.constant 0 : index
    %0 = vector.load %arg0[%c0, %c0_0] : memref<128x128xbf16, #tpu.memory_space<vmem>>, vector<128x128xbf16>
    %c0_1 = arith.constant 0 : index
    %c0_2 = arith.constant 0 : index
    %1 = vector.load %arg1[%c0_1, %c0_2] : memref<128x128xbf16, #tpu.memory_space<vmem>>, vector<128x128xbf16>
    %cst = arith.constant dense<0.000000e+00> : vector<128x128xf32>
    %2 = tpu.matmul %0, %1, %cst {dimension_numbers = #tpu.dot_dimension_numbers<[1], [0], [0], [1], [0, 0, 1, 1], [], []>} : vector<128x128xbf16>, vector<128x128xbf16>, vector<128x128xf32> -> vector<128x128xf32>
    %c0_3 = arith.constant 0 : index
    %c0_4 = arith.constant 0 : index
    %3 = vector.load %arg2[%c0_3, %c0_4] : memref<1x128xf32, #tpu.memory_space<vmem>>, vector<1x128xf32>
    %4 = vector.broadcast %3 : vector<1x128xf32> to vector<128x128xf32>
    %5 = arith.addf %2, %4 : vector<128x128xf32>
    %c0_5 = arith.constant 0 : index
    %c0_6 = arith.constant 0 : index
    %6 = vector.load %arg16[%c0_5, %c0_6] : memref<128x128xf32, #tpu.memory_space<vmem>>, vector<128x128xf32>
    tpu.vector_store %arg16[%c0_5, %c0_6], %5 {strides = array<i32>} : memref<128x128xf32, #tpu.memory_space<vmem>>, vector<128x128xf32>,
    %c0_7 = arith.constant 0 : index
    %c0_8 = arith.constant 0 : index
    %7 = vector.load %arg3[%c0_7, %c0_8] : memref<1x128xf32, #tpu.memory_space<vmem>>, vector<1x128xf32>
    %8 = vector.broadcast %7 : vector<1x128xf32> to vector<128x128xf32>
    %9 = arith.mulf %5, %8 : vector<128x128xf32>
    %c0_9 = arith.constant 0 : index
    %c0_10 = arith.constant 0 : index
    %10 = vector.load %arg4[%c0_9, %c0_10] : memref<1x128xf32, #tpu.memory_space<vmem>>, vector<1x128xf32>
    %11 = vector.broadcast %10 : vector<1x128xf32> to vector<128x128xf32>
    %12 = arith.addf %9, %11 : vector<128x128xf32>
    %cst_11 = arith.constant 0.000000e+00 : f32
    %13 = vector.broadcast %cst_11 : f32 to vector<128x128xf32>
    %14 = arith.subf %13, %12 : vector<128x128xf32>
    %15 = math.exp %14 : vector<128x128xf32>
    %cst_12 = arith.constant 1.000000e+00 : f32
    %16 = vector.broadcast %cst_12 : f32 to vector<128x128xf32>
    %17 = arith.addf %16, %15 : vector<128x128xf32>
    %18 = tpu.reciprocal %17 {approx = true} : vector<128x128xf32> -> vector<128x128xf32>
    %19 = arith.mulf %12, %18 : vector<128x128xf32>
    %c0_13 = arith.constant 0 : index
    %c0_14 = arith.constant 0 : index
    %20 = vector.load %arg17[%c0_13, %c0_14] : memref<128x128xf32, #tpu.memory_space<vmem>>, vector<128x128xf32>
    tpu.vector_store %arg17[%c0_13, %c0_14], %19 {strides = array<i32>} : memref<128x128xf32, #tpu.memory_space<vmem>>, vector<128x128xf32>,
    %21 = arith.truncf %19 : vector<128x128xf32> to vector<128x128xbf16>
    %c0_15 = arith.constant 0 : index
    %c0_16 = arith.constant 0 : index
    %c0_17 = arith.constant 0 : index
    %22 = vector.load %arg5[%c0_15, %c0_16, %c0_17] : memref<2x128x128xbf16, #tpu.memory_space<vmem>>, vector<1x128x128xbf16>
    %23 = vector.shape_cast %22 : vector<1x128x128xbf16> to vector<128x128xbf16>
    %cst_18 = arith.constant dense<0.000000e+00> : vector<128x128xf32>
    %24 = tpu.matmul %21, %23, %cst_18 {dimension_numbers = #tpu.dot_dimension_numbers<[1], [0], [0], [1], [0, 0, 1, 1], [], []>} : vector<128x128xbf16>, vector<128x128xbf16>, vector<128x128xf32> -> vector<128x128xf32>
    %c0_19 = arith.constant 0 : index
    %c0_20 = arith.constant 0 : index
    %c0_21 = arith.constant 0 : index
    %25 = vector.load %arg6[%c0_19, %c0_20, %c0_21] : memref<2x1x128xf32, #tpu.memory_space<vmem>>, vector<1x1x128xf32>
    %26 = vector.shape_cast %25 : vector<1x1x128xf32> to vector<1x128xf32>
    %27 = vector.broadcast %26 : vector<1x128xf32> to vector<128x128xf32>
    %28 = arith.addf %24, %27 : vector<128x128xf32>
    %cst_22 = arith.constant 0.000000e+00 : f32
    %29 = vector.broadcast %cst_22 : f32 to vector<128x128xf32>
    %30 = arith.subf %29, %28 : vector<128x128xf32>
    %31 = math.exp %30 : vector<128x128xf32>
    %cst_23 = arith.constant 1.000000e+00 : f32
    %32 = vector.broadcast %cst_23 : f32 to vector<128x128xf32>
    %33 = arith.addf %32, %31 : vector<128x128xf32>
    %34 = tpu.reciprocal %33 {approx = true} : vector<128x128xf32> -> vector<128x128xf32>
    %35 = arith.mulf %28, %34 : vector<128x128xf32>
    %36 = arith.truncf %35 : vector<128x128xf32> to vector<128x128xbf16>
    %c0_24 = arith.constant 0 : index
    %c0_25 = arith.constant 0 : index
    %c0_26 = arith.constant 0 : index
    %37 = vector.load %arg7[%c0_24, %c0_25, %c0_26] : memref<2x128x128xbf16, #tpu.memory_space<vmem>>, vector<1x128x128xbf16>
    %38 = vector.shape_cast %37 : vector<1x128x128xbf16> to vector<128x128xbf16>
    %cst_27 = arith.constant dense<0.000000e+00> : vector<128x128xf32>
    %39 = tpu.matmul %36, %38, %cst_27 {dimension_numbers = #tpu.dot_dimension_numbers<[1], [0], [0], [1], [0, 0, 1, 1], [], []>} : vector<128x128xbf16>, vector<128x128xbf16>, vector<128x128xf32> -> vector<128x128xf32>
    %c0_28 = arith.constant 0 : index
    %c0_29 = arith.constant 0 : index
    %c0_30 = arith.constant 0 : index
    %40 = vector.load %arg8[%c0_28, %c0_29, %c0_30] : memref<2x1x128xf32, #tpu.memory_space<vmem>>, vector<1x1x128xf32>
    %41 = vector.shape_cast %40 : vector<1x1x128xf32> to vector<1x128xf32>
    %42 = vector.broadcast %41 : vector<1x128xf32> to vector<128x128xf32>
    %43 = arith.addf %39, %42 : vector<128x128xf32>
    %44 = arith.addf %43, %19 : vector<128x128xf32>
    %c0_31 = arith.constant 0 : index
    %c0_32 = arith.constant 0 : index
    %45 = vector.load %arg18[%c0_31, %c0_32] : memref<128x128xf32, #tpu.memory_space<vmem>>, vector<128x128xf32>
    tpu.vector_store %arg18[%c0_31, %c0_32], %44 {strides = array<i32>} : memref<128x128xf32, #tpu.memory_space<vmem>>, vector<128x128xf32>,
    %46 = arith.truncf %44 : vector<128x128xf32> to vector<128x128xbf16>
    %c1 = arith.constant 1 : index
    %c0_33 = arith.constant 0 : index
    %c0_34 = arith.constant 0 : index
    %47 = vector.load %arg5[%c1, %c0_33, %c0_34] : memref<2x128x128xbf16, #tpu.memory_space<vmem>>, vector<1x128x128xbf16>
    %48 = vector.shape_cast %47 : vector<1x128x128xbf16> to vector<128x128xbf16>
    %cst_35 = arith.constant dense<0.000000e+00> : vector<128x128xf32>
    %49 = tpu.matmul %46, %48, %cst_35 {dimension_numbers = #tpu.dot_dimension_numbers<[1], [0], [0], [1], [0, 0, 1, 1], [], []>} : vector<128x128xbf16>, vector<128x128xbf16>, vector<128x128xf32> -> vector<128x128xf32>
    %c1_36 = arith.constant 1 : index
    %c0_37 = arith.constant 0 : index
    %c0_38 = arith.constant 0 : index
    %50 = vector.load %arg6[%c1_36, %c0_37, %c0_38] : memref<2x1x128xf32, #tpu.memory_space<vmem>>, vector<1x1x128xf32>
    %51 = vector.shape_cast %50 : vector<1x1x128xf32> to vector<1x128xf32>
    %52 = vector.broadcast %51 : vector<1x128xf32> to vector<128x128xf32>
    %53 = arith.addf %49, %52 : vector<128x128xf32>
    %cst_39 = arith.constant 0.000000e+00 : f32
    %54 = vector.broadcast %cst_39 : f32 to vector<128x128xf32>
    %55 = arith.subf %54, %53 : vector<128x128xf32>
    %56 = math.exp %55 : vector<128x128xf32>
    %cst_40 = arith.constant 1.000000e+00 : f32
    %57 = vector.broadcast %cst_40 : f32 to vector<128x128xf32>
    %58 = arith.addf %57, %56 : vector<128x128xf32>
    %59 = tpu.reciprocal %58 {approx = true} : vector<128x128xf32> -> vector<128x128xf32>
    %60 = arith.mulf %53, %59 : vector<128x128xf32>
    %61 = arith.truncf %60 : vector<128x128xf32> to vector<128x128xbf16>
    %c1_41 = arith.constant 1 : index
    %c0_42 = arith.constant 0 : index
    %c0_43 = arith.constant 0 : index
    %62 = vector.load %arg7[%c1_41, %c0_42, %c0_43] : memref<2x128x128xbf16, #tpu.memory_space<vmem>>, vector<1x128x128xbf16>
    %63 = vector.shape_cast %62 : vector<1x128x128xbf16> to vector<128x128xbf16>
    %cst_44 = arith.constant dense<0.000000e+00> : vector<128x128xf32>
    %64 = tpu.matmul %61, %63, %cst_44 {dimension_numbers = #tpu.dot_dimension_numbers<[1], [0], [0], [1], [0, 0, 1, 1], [], []>} : vector<128x128xbf16>, vector<128x128xbf16>, vector<128x128xf32> -> vector<128x128xf32>
    %c1_45 = arith.constant 1 : index
    %c0_46 = arith.constant 0 : index
    %c0_47 = arith.constant 0 : index
    %65 = vector.load %arg8[%c1_45, %c0_46, %c0_47] : memref<2x1x128xf32, #tpu.memory_space<vmem>>, vector<1x1x128xf32>
    %66 = vector.shape_cast %65 : vector<1x1x128xf32> to vector<1x128xf32>
    %67 = vector.broadcast %66 : vector<1x128xf32> to vector<128x128xf32>
    %68 = arith.addf %64, %67 : vector<128x128xf32>
    %69 = arith.addf %68, %44 : vector<128x128xf32>
    %c0_48 = arith.constant 0 : index
    %c0_49 = arith.constant 0 : index
    %70 = vector.load %arg19[%c0_48, %c0_49] : memref<128x128xf32, #tpu.memory_space<vmem>>, vector<128x128xf32>
    tpu.vector_store %arg19[%c0_48, %c0_49], %69 {strides = array<i32>} : memref<128x128xf32, #tpu.memory_space<vmem>>, vector<128x128xf32>,
    %71 = arith.truncf %69 : vector<128x128xf32> to vector<128x128xbf16>
    %c0_50 = arith.constant 0 : index
    %c0_51 = arith.constant 0 : index
    %72 = vector.load %arg9[%c0_50, %c0_51] : memref<128x128xbf16, #tpu.memory_space<vmem>>, vector<128x128xbf16>
    %cst_52 = arith.constant dense<0.000000e+00> : vector<128x128xf32>
    %73 = tpu.matmul %71, %72, %cst_52 {dimension_numbers = #tpu.dot_dimension_numbers<[1], [0], [0], [1], [0, 0, 1, 1], [], []>} : vector<128x128xbf16>, vector<128x128xbf16>, vector<128x128xf32> -> vector<128x128xf32>
    %c0_53 = arith.constant 0 : index
    %c0_54 = arith.constant 0 : index
    %74 = vector.load %arg10[%c0_53, %c0_54] : memref<1x128xf32, #tpu.memory_space<vmem>>, vector<1x128xf32>
    %75 = vector.broadcast %74 : vector<1x128xf32> to vector<128x128xf32>
    %76 = arith.addf %73, %75 : vector<128x128xf32>
    %c0_55 = arith.constant 0 : index
    %c0_56 = arith.constant 0 : index
    %77 = vector.load %arg20[%c0_55, %c0_56] : memref<128x128xf32, #tpu.memory_space<vmem>>, vector<128x128xf32>
    tpu.vector_store %arg20[%c0_55, %c0_56], %76 {strides = array<i32>} : memref<128x128xf32, #tpu.memory_space<vmem>>, vector<128x128xf32>,
    %c0_57 = arith.constant 0 : index
    %c0_58 = arith.constant 0 : index
    %78 = vector.load %arg11[%c0_57, %c0_58] : memref<1x128xf32, #tpu.memory_space<vmem>>, vector<1x128xf32>
    %79 = vector.broadcast %78 : vector<1x128xf32> to vector<128x128xf32>
    %80 = arith.mulf %76, %79 : vector<128x128xf32>
    %c0_59 = arith.constant 0 : index
    %c0_60 = arith.constant 0 : index
    %81 = vector.load %arg12[%c0_59, %c0_60] : memref<1x128xf32, #tpu.memory_space<vmem>>, vector<1x128xf32>
    %82 = vector.broadcast %81 : vector<1x128xf32> to vector<128x128xf32>
    %83 = arith.addf %80, %82 : vector<128x128xf32>
    %cst_61 = arith.constant 0.000000e+00 : f32
    %84 = vector.broadcast %cst_61 : f32 to vector<128x128xf32>
    %85 = arith.subf %84, %83 : vector<128x128xf32>
    %86 = math.exp %85 : vector<128x128xf32>
    %cst_62 = arith.constant 1.000000e+00 : f32
    %87 = vector.broadcast %cst_62 : f32 to vector<128x128xf32>
    %88 = arith.addf %87, %86 : vector<128x128xf32>
    %89 = tpu.reciprocal %88 {approx = true} : vector<128x128xf32> -> vector<128x128xf32>
    %90 = arith.mulf %83, %89 : vector<128x128xf32>
    %c0_63 = arith.constant 0 : index
    %c0_64 = arith.constant 0 : index
    %91 = vector.load %arg21[%c0_63, %c0_64] : memref<128x128xf32, #tpu.memory_space<vmem>>, vector<128x128xf32>
    tpu.vector_store %arg21[%c0_63, %c0_64], %90 {strides = array<i32>} : memref<128x128xf32, #tpu.memory_space<vmem>>, vector<128x128xf32>,
    %c0_65 = arith.constant 0 : index
    %c0_66 = arith.constant 0 : index
    %92 = vector.load %arg15[%c0_65, %c0_66] : memref<2x128xf32, #tpu.memory_space<vmem>>, vector<2x128xf32>
    %cst_67 = arith.constant dense<0.000000e+00> : vector<2x128xf32>
    %93 = tpu.matmul %92, %90, %cst_67 {dimension_numbers = #tpu.dot_dimension_numbers<[1], [0], [0], [1], [0, 0, 1, 1], [], []>} : vector<2x128xf32>, vector<128x128xf32>, vector<2x128xf32> -> vector<2x128xf32>
    %c0_68 = arith.constant 0 : index
    %c0_69 = arith.constant 0 : index
    %94 = vector.load %arg22[%c0_68, %c0_69] : memref<2x128xf32, #tpu.memory_space<vmem>>, vector<2x128xf32>
    tpu.vector_store %arg22[%c0_68, %c0_69], %93 {strides = array<i32>} : memref<2x128xf32, #tpu.memory_space<vmem>>, vector<2x128xf32>,
    %95 = arith.truncf %93 : vector<2x128xf32> to vector<2x128xbf16>
    %c0_70 = arith.constant 0 : index
    %c0_71 = arith.constant 0 : index
    %96 = vector.load %arg13[%c0_70, %c0_71] : memref<128x128xbf16, #tpu.memory_space<vmem>>, vector<128x128xbf16>
    %cst_72 = arith.constant dense<0.000000e+00> : vector<2x128xf32>
    %97 = tpu.matmul %95, %96, %cst_72 {dimension_numbers = #tpu.dot_dimension_numbers<[1], [0], [0], [1], [0, 0, 1, 1], [], []>} : vector<2x128xbf16>, vector<128x128xbf16>, vector<2x128xf32> -> vector<2x128xf32>
    %c0_73 = arith.constant 0 : index
    %c0_74 = arith.constant 0 : index
    %98 = vector.load %arg14[%c0_73, %c0_74] : memref<1x128xf32, #tpu.memory_space<vmem>>, vector<1x128xf32>
    %99 = vector.broadcast %98 : vector<1x128xf32> to vector<2x128xf32>
    %100 = arith.addf %97, %99 : vector<2x128xf32>
    %c0_75 = arith.constant 0 : index
    %c0_76 = arith.constant 0 : index
    %101 = vector.load %arg23[%c0_75, %c0_76] : memref<2x128xf32, #tpu.memory_space<vmem>>, vector<2x128xf32>
    tpu.vector_store %arg23[%c0_75, %c0_76], %100 {strides = array<i32>} : memref<2x128xf32, #tpu.memory_space<vmem>>, vector<2x128xf32>,
    return
  }
}

</mosaic_0001>

<bundles_post_ra>
// kernel: encoder_effnet_forward.1
= control target key start
LH: loop header
LB: loop body
LE: loop exit
PB: predicated region body
PF: predicated region fallthrough
CT: control target
= control target key end

     0   :  { %s4165_s0 = inlined_call_operand.vmem [shape: bf16[128,128], index: 0, kind: input, shape index: {}]   ;;  %s4166_s1 = inlined_call_operand.vmem [shape: bf16[128,128], index: 1, kind: input, shape index: {}]   ;;  %s4167_s2 = inlined_call_operand.vmem [shape: f32[1,128], index: 2, kind: input, shape index: {}]   ;;  %s4168_s3 = inlined_call_operand.vmem [shape: f32[1,128], index: 3, kind: input, shape index: {}]   ;;  %s4169_s4 = inlined_call_operand.vmem [shape: f32[1,128], index: 4, kind: input, shape index: {}]   ;;  %s4170_s5 = inlined_call_operand.vmem [shape: bf16[2,128,128], index: 5, kind: input, shape index: {}]   ;;  %s4171_s6 = inlined_call_operand.vmem [shape: f32[2,1,128], index: 6, kind: input, shape index: {}]   ;;  %s4172_s7 = inlined_call_operand.vmem [shape: bf16[2,128,128], index: 7, kind: input, shape index: {}]   ;;  %s4173_s8 = inlined_call_operand.vmem [shape: f32[2,1,128], index: 8, kind: input, shape index: {}]   ;;  %s4174_s9 = inlined_call_operand.vmem [shape: bf16[128,128], index: 9, kind: input, shape index: {}]   ;;  %s4175_s10 = inlined_call_operand.vmem [shape: f32[1,128], index: 10, kind: input, shape index: {}]   ;;  %s4176_s11 = inlined_call_operand.vmem [shape: f32[1,128], index: 11, kind: input, shape index: {}]   ;;  %s4177_s12 = inlined_call_operand.vmem [shape: f32[1,128], index: 12, kind: input, shape index: {}]   ;;  %s4178_s13 = inlined_call_operand.vmem [shape: bf16[128,128], index: 13, kind: input, shape index: {}]   ;;  %s4179_s14 = inlined_call_operand.vmem [shape: f32[1,128], index: 14, kind: input, shape index: {}]   ;;  %s4180_s15 = inlined_call_operand.vmem [shape: f32[2,128], index: 15, kind: input, shape index: {}]   ;;  %s4181_s16 = inlined_call_operand.vmem [shape: f32[128,128], index: 16, kind: output, shape index: {0}]   ;;  %s4182_s17 = inlined_call_operand.vmem [shape: f32[128,128], index: 17, kind: output, shape index: {1}]   ;;  %s4183_s18 = inlined_call_operand.vmem [shape: f32[128,128], index: 18, kind: output, shape index: {2}]   ;;  %s4184_s19 = inlined_call_operand.vmem [shape: f32[128,128], index: 19, kind: output, shape index: {3}]   ;;  %s4185_s20 = inlined_call_operand.vmem [shape: f32[128,128], index: 20, kind: output, shape index: {4}]   ;;  %s4186_s21 = inlined_call_operand.vmem [shape: f32[128,128], index: 21, kind: output, shape index: {5}]   ;;  %s4187_s22 = inlined_call_operand.hbm [shape: f32[2,128], index: 22, kind: output, shape index: {6}]   ;;  %s4188_s23 = inlined_call_operand.hbm [shape: f32[2,128], index: 23, kind: output, shape index: {7}]  }
   0x1   :  { %4194 = sst [smem:[#allocation8_spill]] %s4165_s0 }
   0x2   :  { %4195 = sst [smem:[#allocation9_spill]] %s4166_s1 }
   0x3   :  { %4196 = sst [smem:[#allocation10_spill]] %s4167_s2 }
   0x4   :  { %4197 = sst [smem:[#allocation11_spill]] %s4168_s3 }
   0x5   :  { %4198 = sst [smem:[#allocation12_spill]] %s4169_s4 }
   0x6   :  { %4199 = sst [smem:[#allocation13_spill]] %s4170_s5 }
   0x7   :  { %4200 = sst [smem:[#allocation14_spill]] %s4171_s6 }
   0x8   :  { %4201 = sst [smem:[#allocation15_spill]] %s4172_s7 }
   0x9   :  { %29 = vsyncpa [#allocation3], 0  ;;  %s4202_s24 = sld [smem:[#allocation9_spill]]  ;;  %s4203_s28 = sld [smem:[#allocation8_spill]] }
   0xf   :  { %v2528_v0 = vld [vmem:[%s4202_s24] sm:$0xff]   ;;  %v2529_v1 = vld [vmem:[%s4202_s24 + $0x8] sm:$0xff]   ;;  %v2530_v2 = vld [vmem:[%s4202_s24 + $0x10] sm:$0xff]  }
  0x10   :  { %2252 = vmatprep.subr.bf16.mxu0 %v2528_v0  ;;  %v2531_v3 = vld [vmem:[%s4202_s24 + $0x18] sm:$0xff]   ;;  %v2536_v4 = vld [vmem:[%s4203_s28] sm:$0xff]   ;;  %v2533_v6 = vld [vmem:[%s4202_s24 + $0x28] sm:$0xff]  }
  0x11   :  { %2253 = vmatpush3.bf16.msra.mxu0 %v2528_v0  ;;  %2268 = vmatprep.mubr.bf16.mxu0 %v2536_v4  ;;  %v2532_v5 = vld [vmem:[%s4202_s24 + $0x20] sm:$0xff]   ;;  %v2534_v7 = vld [vmem:[%s4202_s24 + $0x30] sm:$0xff]   ;;  %v2535_v8 = vld [vmem:[%s4202_s24 + $0x38] sm:$0xff]  }
  0x12   :  { %2254 = vmatprep.subr.bf16.mxu0 %v2529_v1  ;;  %v2537_v9 = vld [vmem:[%s4203_s28 + $0x8] sm:$0xff]   ;;  %v2538_v10 = vld [vmem:[%s4203_s28 + $0x10] sm:$0xff]   ;;  %v2539_v11 = vld [vmem:[%s4203_s28 + $0x18] sm:$0xff]  }
  0x13   :  { %v2540_v12 = vld [vmem:[%s4203_s28 + $0x20] sm:$0xff]   ;;  %v2541_v13 = vld [vmem:[%s4203_s28 + $0x28] sm:$0xff]   ;;  %v2542_v14 = vld [vmem:[%s4203_s28 + $0x30] sm:$0xff]  }
  0x15   :  { %2255 = vmatpush3.bf16.msra.mxu0 %v2529_v1 }
  0x16   :  { %2256 = vmatprep.subr.bf16.mxu0 %v2530_v2 }
  0x19   :  { %2257 = vmatpush3.bf16.msra.mxu0 %v2530_v2 }
  0x1a   :  { %2258 = vmatprep.subr.bf16.mxu0 %v2531_v3 }
  0x1d   :  { %2259 = vmatpush3.bf16.msra.mxu0 %v2531_v3 }
  0x1e   :  { %2260 = vmatprep.subr.bf16.mxu0 %v2532_v5 }
  0x21   :  { %2261 = vmatpush3.bf16.msra.mxu0 %v2532_v5 }
  0x22   :  { %2262 = vmatprep.subr.bf16.mxu0 %v2533_v6 }
  0x25   :  { %2263 = vmatpush3.bf16.msra.mxu0 %v2533_v6 }
  0x26   :  { %2264 = vmatprep.subr.bf16.mxu0 %v2534_v7 }
  0x29   :  { %2265 = vmatpush3.bf16.msra.mxu0 %v2534_v7 }
  0x2a   :  { %2266 = vmatprep.subr.bf16.mxu0 %v2535_v8 }
  0x2d   :  { %2267 = vmatpush3.bf16.msra.mxu0 %v2535_v8 }
  0x30   :  { %2269 = vmatmul.mubr.bf16.vlgmr.msra.gmra.mrb[0].mxu0 %v2537_v9 }
  0x31   :  { %2272 = vmatprep.mubr.bf16.mxu0 %v2538_v10 }
  0x38   :  { %2273 = vmatmul.mubr.bf16.gmra.mrb[4].mxu0 %v2539_v11 }
  0x39   :  { %2276 = vmatprep.mubr.bf16.mxu0 %v2540_v12 }
  0x3a   :  { %30 = vsyncpa [#allocation5], 0  ;;  %v2543_v15 = vld [vmem:[%s4203_s28 + $0x38] sm:$0xff]   ;;  %s4204_s6 = sld [smem:[#allocation13_spill]]  ;;  %s4205_s29 = sld [smem:[#allocation10_spill]]  ;;  %vm2897_vm0 = vmmov 0  }
  0x3b   :  { %s4206_s3 = sld [smem:[#allocation11_spill]]  ;;  %s4207_s30 = sld [smem:[#allocation12_spill]] }
  0x3c   :  { %s4209_s27 = sld [smem:[#allocation14_spill]] }
  0x40   :  { %2277 = vmatmul.mubr.bf16.gmra.mrb[8].mxu0 %v2541_v13  ;;  %v2544_v16 = vld [vmem:[%s4204_s6] sm:$0xff]   ;;  %v2545_v17 = vld [vmem:[%s4204_s6 + $0x8] sm:$0xff]   ;;  %v2546_v18 = vld [vmem:[%s4204_s6 + $0x10] sm:$0xff]  }
  0x41   :  { %2280 = vmatprep.mubr.bf16.mxu0 %v2542_v14  ;;  %2284 = vmatprep.subr.bf16.mxu1 %v2544_v16  ;;  %v2547_v19 = vld [vmem:[%s4204_s6 + $0x18] sm:$0xff]   ;;  %v2548_v20 = vld [vmem:[%s4204_s6 + $0x20] sm:$0xff]   ;;  %v2549_v21 = vld [vmem:[%s4204_s6 + $0x28] sm:$0xff]  }
  0x42   :  { %2285 = vmatpush3.bf16.msra.mxu1 %v2544_v16  ;;  %v2550_v22 = vld [vmem:[%s4204_s6 + $0x30] sm:$0xff]   ;;  %v2551_v23 = vld [vmem:[%s4204_s6 + $0x38] sm:$0xff]   ;;  %v3096_v24 = vld [vmem:[%s4205_s29] ss:$0 sm:$0xff]  ;;  %s4208_s29 = sld [smem:[#allocation15_spill]] }
  0x43   :  { %2286 = vmatprep.subr.bf16.mxu1 %v2545_v17  ;;  %v3101_v26 = vld [vmem:[%s4206_s3] ss:$0 sm:$0xff] }
  0x44   :  { %v3107_v29 = vld [vmem:[%s4207_s30] ss:$0 sm:$0xff] }
  0x46   :  { %2287 = vmatpush3.bf16.msra.mxu1 %v2545_v17 }
  0x47   :  { %2288 = vmatprep.subr.bf16.mxu1 %v2546_v18 }
  0x48   :  { %2281 = vmatmul.mubr.bf16.gmra.mrb[12].mxu0 %v2543_v15 }
  0x4a   :  { %2289 = vmatpush3.bf16.msra.mxu1 %v2546_v18 }
  0x4b   :  { %2290 = vmatprep.subr.bf16.mxu1 %v2547_v19 }
  0x4e   :  { %2291 = vmatpush3.bf16.msra.mxu1 %v2547_v19 }
  0x4f   :  { %2292 = vmatprep.subr.bf16.mxu1 %v2548_v20 }
  0x52   :  { %2293 = vmatpush3.bf16.msra.mxu1 %v2548_v20 }
  0x53   :  { %2294 = vmatprep.subr.bf16.mxu1 %v2549_v21 }
  0x56   :  { %2295 = vmatpush3.bf16.msra.mxu1 %v2549_v21 }
  0x57   :  { %2296 = vmatprep.subr.bf16.mxu1 %v2550_v22 }
  0x5a   :  { %2297 = vmatpush3.bf16.msra.mxu1 %v2550_v22 }
  0x5b   :  { %2298 = vmatprep.subr.bf16.mxu1 %v2551_v23 }
  0x5e   :  { %2299 = vmatpush3.bf16.msra.mxu1 %v2551_v23 }
 0x103   :  { %v2270_v25 = vpop.f32.mrb[0].mxu0 }
 0x104   :  { %v242_v27 = vadd.f32 %v2270_v25, %v3096_v24  ;;  %v233_v28 = vpop.f32.mrb[1].mxu0 }
 0x105   :  { %v234_v30 = vadd.f32 %v3096_v24, %v233_v28  ;;  %v2271_v31 = vpop.f32.mrb[2].mxu0 }
 0x106   :  { %298 = vst [vmem:[%s4181_s16 + $0x10] sm:$0xff] %v242_v27  ;;  %v321_v32 = vmul.f32 %v3101_v26, %v242_v27  ;;  %v245_v33 = vadd.f32 %v2271_v31, %v3096_v24  ;;  %v236_v34 = vpop.f32.mrb[3].mxu0 }
 0x107   :  { %296 = vst [vmem:[%s4181_s16] sm:$0xff] %v234_v30  ;;  %v319_v35 = vmul.f32 %v3101_v26, %v234_v30  ;;  %v237_v36 = vadd.f32 %v3096_v24, %v236_v34 }
 0x108   :  { %v3121_v37 = vadd.f32 %v3107_v29, %v321_v32  ;;  %299 = vst [vmem:[%s4181_s16 + $0x18] sm:$0xff] %v245_v33  ;;  %v322_v38 = vmul.f32 %v3101_v26, %v245_v33 }
 0x109   :  { %v3128_v39 = vadd.f32 %v3107_v29, %v319_v35  ;;  %297 = vst [vmem:[%s4181_s16 + $0x8] sm:$0xff] %v237_v36  ;;  %v320_v40 = vmul.f32 %v3101_v26, %v237_v36 }
 0x10a   :  { %v360_v41 = vsub.f32 0.0, %v3121_v37  ;;  %v3136_v42 = vadd.f32 %v3107_v29, %v322_v38 }
 0x10b   :  { %v358_v43 = vsub.f32 0.0, %v3128_v39  ;;  %v3140_v44 = vadd.f32 %v3107_v29, %v320_v40  ;;  %v2274_v45 = vpop.f32.mrb[4].mxu0 }
 0x10c   :  { %v378_v46 = vmul.f32 1.442695, %v360_v41  ;;  %v361_v47 = vsub.f32 0.0, %v3136_v42  ;;  %v258_v48 = vadd.f32 %v2274_v45, %v3096_v24  ;;  %v249_v49 = vpop.f32.mrb[5].mxu0 }
 0x10d   :  { %v374_v50 = vmul.f32 1.442695, %v358_v43  ;;  %v359_v51 = vsub.f32 0.0, %v3140_v44  ;;  %v250_v52 = vadd.f32 %v3096_v24, %v249_v49  ;;  %v2275_v53 = vpop.f32.mrb[6].mxu0 }
 0x10e   :  { %2592 = vpow2.f32 %v378_v46  ;;  %v380_v54 = vmul.f32 1.442695, %v361_v47  ;;  %302 = vst [vmem:[%s4181_s16 + $0x30] sm:$0xff] %v258_v48  ;;  %v325_v55 = vmul.f32 %v3101_v26, %v258_v48  ;;  %v261_v56 = vadd.f32 %v2275_v53, %v3096_v24  ;;  %v252_v57 = vpop.f32.mrb[7].mxu0 }
 0x10f   :  { %2594 = vpow2.f32 %v374_v50  ;;  %v376_v58 = vmul.f32 1.442695, %v359_v51  ;;  %300 = vst [vmem:[%s4181_s16 + $0x20] sm:$0xff] %v250_v52  ;;  %v323_v59 = vmul.f32 %v3101_v26, %v250_v52  ;;  %v253_v60 = vadd.f32 %v3096_v24, %v252_v57 }
 0x110   :  { %2596 = vpow2.f32 %v380_v54  ;;  %v3157_v61 = vadd.f32 %v3107_v29, %v325_v55  ;;  %303 = vst [vmem:[%s4181_s16 + $0x38] sm:$0xff] %v261_v56  ;;  %v326_v62 = vmul.f32 %v3101_v26, %v261_v56 }
 0x111   :  { %2598 = vpow2.f32 %v376_v58  ;;  %v3164_v63 = vadd.f32 %v3107_v29, %v323_v59  ;;  %301 = vst [vmem:[%s4181_s16 + $0x28] sm:$0xff] %v253_v60  ;;  %v324_v0 = vmul.f32 %v3101_v26, %v253_v60 }
 0x112   :  { %v364_v1 = vsub.f32 0.0, %v3157_v61  ;;  %v3172_v2 = vadd.f32 %v3107_v29, %v326_v62 }
 0x113   :  { %v362_v3 = vsub.f32 0.0, %v3164_v63  ;;  %v3176_v4 = vadd.f32 %v3107_v29, %v324_v0  ;;  %v2278_v5 = vpop.f32.mrb[8].mxu0 }
 0x114   :  { %v386_v6 = vmul.f32 1.442695, %v364_v1  ;;  %v365_v7 = vsub.f32 0.0, %v3172_v2  ;;  %v274_v8 = vadd.f32 %v2278_v5, %v3096_v24  ;;  %v265_v9 = vpop.f32.mrb[9].mxu0 }
 0x115   :  { %v382_v10 = vmul.f32 1.442695, %v362_v3  ;;  %v363_v11 = vsub.f32 0.0, %v3176_v4  ;;  %v266_v12 = vadd.f32 %v3096_v24, %v265_v9  ;;  %v2279_v13 = vpop.f32.mrb[10].mxu0 }
 0x116   :  { %2600 = vpow2.f32 %v386_v6  ;;  %v388_v14 = vmul.f32 1.442695, %v365_v7  ;;  %306 = vst [vmem:[%s4181_s16 + $0x50] sm:$0xff] %v274_v8  ;;  %v329_v15 = vmul.f32 %v3101_v26, %v274_v8  ;;  %v277_v16 = vadd.f32 %v2279_v13, %v3096_v24  ;;  %v268_v17 = vpop.f32.mrb[11].mxu0 }
 0x117   :  { %2602 = vpow2.f32 %v382_v10  ;;  %v384_v18 = vmul.f32 1.442695, %v363_v11  ;;  %304 = vst [vmem:[%s4181_s16 + $0x40] sm:$0xff] %v266_v12  ;;  %v327_v19 = vmul.f32 %v3101_v26, %v266_v12  ;;  %v269_v20 = vadd.f32 %v3096_v24, %v268_v17 }
 0x118   :  { %v2593_v21 = vpop.eup %2592  ;;  %2604 = vpow2.f32 %v388_v14  ;;  %v3193_v22 = vadd.f32 %v3107_v29, %v329_v15  ;;  %307 = vst [vmem:[%s4181_s16 + $0x58] sm:$0xff] %v277_v16  ;;  %v330_v23 = vmul.f32 %v3101_v26, %v277_v16 }
 0x119   :  { %v2595_v25 = vpop.eup %2594  ;;  %v408_v27 = vadd.f32 1.0, %v2593_v21  ;;  %2606 = vpow2.f32 %v384_v18  ;;  %v3200_v28 = vadd.f32 %v3107_v29, %v327_v19  ;;  %305 = vst [vmem:[%s4181_s16 + $0x48] sm:$0xff] %v269_v20  ;;  %v328_v30 = vmul.f32 %v3101_v26, %v269_v20 }
 0x11a   :  { %v2597_v31 = vpop.eup %2596  ;;  %v406_v32 = vadd.f32 1.0, %v2595_v25  ;;  %v368_v33 = vsub.f32 0.0, %v3193_v22  ;;  %v3208_v34 = vadd.f32 %v3107_v29, %v330_v23 }
 0x11b   :  { %v2599_v35 = vpop.eup %2598  ;;  %2608 = vrcp.f32 %v408_v27  ;;  %v409_v36 = vadd.f32 1.0, %v2597_v31  ;;  %v366_v38 = vsub.f32 0.0, %v3200_v28  ;;  %v3212_v40 = vadd.f32 %v3107_v29, %v328_v30  ;;  %v2282_v41 = vpop.f32.mrb[12].mxu0 }
 0x11c   :  { %2610 = vrcp.f32 %v406_v32  ;;  %v407_v43 = vadd.f32 1.0, %v2599_v35  ;;  %v394_v45 = vmul.f32 1.442695, %v368_v33  ;;  %v369_v46 = vsub.f32 0.0, %v3208_v34  ;;  %v281_v47 = vpop.f32.mrb[13].mxu0 }
 0x11d   :  { %2612 = vrcp.f32 %v409_v36  ;;  %v390_v48 = vmul.f32 1.442695, %v366_v38  ;;  %v367_v49 = vsub.f32 0.0, %v3212_v40  ;;  %v290_v50 = vadd.f32 %v2282_v41, %v3096_v24  ;;  %v2283_v51 = vpop.f32.mrb[14].mxu0 }
 0x11e   :  { %2614 = vrcp.f32 %v407_v43  ;;  %v396_v52 = vmul.f32 1.442695, %v369_v46  ;;  %v282_v53 = vadd.f32 %v3096_v24, %v281_v47  ;;  %v293_v54 = vadd.f32 %v2283_v51, %v3096_v24  ;;  %v284_v55 = vpop.f32.mrb[15].mxu0 }
 0x11f   :  { %2616 = vpow2.f32 %v394_v45  ;;  %v392_v56 = vmul.f32 1.442695, %v367_v49  ;;  %310 = vst [vmem:[%s4181_s16 + $0x70] sm:$0xff] %v290_v50  ;;  %v333_v57 = vmul.f32 %v3101_v26, %v290_v50  ;;  %v285_v58 = vadd.f32 %v3096_v24, %v284_v55 }
 0x120   :  { %v2601_v59 = vpop.eup %2600  ;;  %2618 = vpow2.f32 %v390_v48  ;;  %308 = vst [vmem:[%s4181_s16 + $0x60] sm:$0xff] %v282_v53  ;;  %v331_v60 = vmul.f32 %v3101_v26, %v282_v53  ;;  %311 = vst [vmem:[%s4181_s16 + $0x78] sm:$0xff] %v293_v54  ;;  %v334_v62 = vmul.f32 %v3101_v26, %v293_v54 }
 0x121   :  { %v2603_v0 = vpop.eup %2602  ;;  %v412_v1 = vadd.f32 1.0, %v2601_v59  ;;  %2620 = vpow2.f32 %v396_v52  ;;  %v3233_v3 = vadd.f32 %v3107_v29, %v333_v57  ;;  %309 = vst [vmem:[%s4181_s16 + $0x68] sm:$0xff] %v285_v58  ;;  %v332_v24 = vmul.f32 %v3101_v26, %v285_v58 }
 0x122   :  { %v2605_v5 = vpop.eup %2604  ;;  %v410_v6 = vadd.f32 1.0, %v2603_v0  ;;  %2622 = vpow2.f32 %v392_v56  ;;  %v3240_v7 = vadd.f32 %v3107_v29, %v331_v60  ;;  %v3243_v8 = vadd.f32 %v3107_v29, %v334_v62 }
 0x123   :  { %v2607_v9 = vpop.eup %2606  ;;  %2624 = vrcp.f32 %v412_v1  ;;  %v413_v10 = vadd.f32 1.0, %v2605_v5  ;;  %v372_v11 = vsub.f32 0.0, %v3233_v3  ;;  %v3247_v12 = vadd.f32 %v3107_v29, %v332_v24 }
 0x124   :  { %2626 = vrcp.f32 %v410_v6  ;;  %v411_v13 = vadd.f32 1.0, %v2607_v9  ;;  %v370_v26 = vsub.f32 0.0, %v3240_v7  ;;  %v373_v14 = vsub.f32 0.0, %v3243_v8 }
 0x125   :  { %v2609_v15 = vpop.eup %2608  ;;  %2628 = vrcp.f32 %v413_v10  ;;  %v402_v16 = vmul.f32 1.442695, %v372_v11  ;;  %v371_v17 = vsub.f32 0.0, %v3247_v12 }
 0x126   :  { %v2611_v18 = vpop.eup %2610  ;;  %v3253_v19 = vmul.f32 %v2609_v15, %v3121_v37  ;;  %2630 = vrcp.f32 %v411_v13  ;;  %v398_v20 = vmul.f32 1.442695, %v370_v26  ;;  %v404_v21 = vmul.f32 1.442695, %v373_v14  ;;  %v2553_v26 = vld [vmem:[%s4208_s29 + $0x8] sm:$0xff]   ;;  %v2554_v14 = vld [vmem:[%s4208_s29 + $0x10] sm:$0xff]  }
 0x127   :  { %v2613_v29 = vpop.eup %2612  ;;  %2632 = vpow2.f32 %v402_v16  ;;  %v400_v23 = vmul.f32 1.442695, %v371_v17  ;;  %v3256_v25 = vmul.f32 %v2611_v18, %v3128_v39  ;;  %v2555_v15 = vld [vmem:[%s4208_s29 + $0x18] sm:$0xff]   ;;  %v2556_v16 = vld [vmem:[%s4208_s29 + $0x20] sm:$0xff]   ;;  %v2557_v17 = vld [vmem:[%s4208_s29 + $0x28] sm:$0xff]  }
 0x128   :  { %v2615_v27 = vpop.eup %2614  ;;  %456 = vst [vmem:[%s4182_s17 + $0x10] sm:$0xff] %v3253_v19  ;;  %v3263_v30 = vmul.f32 %v2613_v29, %v3136_v42  ;;  %2634 = vpow2.f32 %v398_v20  ;;  %v2558_v18 = vld [vmem:[%s4208_s29 + $0x30] sm:$0xff]   ;;  %v2559_v20 = vld [vmem:[%s4208_s29 + $0x38] sm:$0xff]   ;;  %v2561_v29 = vld [vmem:[%s4204_s6 + $0x48] sm:$0xff]  }
 0x129   :  { %v2617_v37 = vpop.eup %2616  ;;  %2636 = vpow2.f32 %v404_v21  ;;  %v3266_v31 = vmul.f32 %v2615_v27, %v3140_v44  ;;  %454 = vst [vmem:[%s4182_s17] sm:$0xff] %v3256_v25  ;;  %v2560_v21 = vld [vmem:[%s4204_s6 + $0x40] sm:$0xff]   ;;  %v2563_v27 = vld [vmem:[%s4204_s6 + $0x58] sm:$0xff]  }
 0x12a   :  { %v2619_v39 = vpop.eup %2618  ;;  %457 = vst [vmem:[%s4182_s17 + $0x18] sm:$0xff] %v3263_v30  ;;  %v416_v32 = vadd.f32 1.0, %v2617_v37  ;;  %2638 = vpow2.f32 %v400_v23  ;;  %v471_v38 = vpack.c.bf16 %v3263_v30, %v3253_v19  ;;  %2348 = vmatprep.subr.bf16.mxu1 %v2560_v21  ;;  %v2562_v23 = vld [vmem:[%s4204_s6 + $0x50] sm:$0xff]   ;;  %v2564_v37 = vld [vmem:[%s4204_s6 + $0x60] sm:$0xff]  }
 0x12b   :  { %v2621_v42 = vpop.eup %2620  ;;  %v414_v33 = vadd.f32 1.0, %v2619_v39  ;;  %455 = vst [vmem:[%s4182_s17 + $0x8] sm:$0xff] %v3266_v31  ;;  %v470_v44 = vpack.c.bf16 %v3266_v31, %v3256_v25  ;;  %v2565_v39 = vld [vmem:[%s4204_s6 + $0x68] sm:$0xff]  }
 0x12c   :  { %v2623_v35 = vpop.eup %2622  ;;  %2640 = vrcp.f32 %v416_v32  ;;  %v417_v36 = vadd.f32 1.0, %v2621_v42  ;;  %v3425_v32 = vld [vmem:[%s4209_s27] ss:$0 sm:$0xff] }
 0x12d   :  { %v2625_v41 = vpop.eup %2624  ;;  %2642 = vrcp.f32 %v414_v33  ;;  %v415_v43 = vadd.f32 1.0, %v2623_v35  ;;  %2300 = vmatprep.mubr.bf16.mxu1 %v470_v44 }
 0x12e   :  { %v2627_v45 = vpop.eup %2626  ;;  %v3285_v46 = vmul.f32 %v2625_v41, %v3157_v61  ;;  %2644 = vrcp.f32 %v417_v36  ;;  %2301 = vmatmul.mubr.bf16.vlgmr.msra.gmra.mrb[0].mxu1 %v471_v38 }
 0x12f   :  { %v2629_v47 = vpop.eup %2628  ;;  %v3288_v48 = vmul.f32 %v2627_v45, %v3164_v63  ;;  %2646 = vrcp.f32 %v415_v43  ;;  %2349 = vmatpush3.bf16.msra.mxu1 %v2560_v21 }
 0x130   :  { %v2631_v49 = vpop.eup %2630  ;;  %460 = vst [vmem:[%s4182_s17 + $0x30] sm:$0xff] %v3285_v46  ;;  %v3295_v50 = vmul.f32 %v2629_v47, %v3172_v2  ;;  %2350 = vmatprep.subr.bf16.mxu1 %v2561_v29 }
 0x131   :  { %v2633_v51 = vpop.eup %2632  ;;  %458 = vst [vmem:[%s4182_s17 + $0x20] sm:$0xff] %v3288_v48  ;;  %v3302_v61 = vmul.f32 %v2631_v49, %v3176_v4 }
 0x132   :  { %v2635_v63 = vpop.eup %2634  ;;  %461 = vst [vmem:[%s4182_s17 + $0x38] sm:$0xff] %v3295_v50  ;;  %v420_v52 = vadd.f32 1.0, %v2633_v51  ;;  %v473_v56 = vpack.c.bf16 %v3295_v50, %v3285_v46 }
 0x133   :  { %v2637_v53 = vpop.eup %2636  ;;  %459 = vst [vmem:[%s4182_s17 + $0x28] sm:$0xff] %v3302_v61  ;;  %v418_v2 = vadd.f32 1.0, %v2635_v63  ;;  %v472_v54 = vpack.c.bf16 %v3302_v61, %v3288_v48  ;;  %2351 = vmatpush3.bf16.msra.mxu1 %v2561_v29 }
 0x134   :  { %v2639_v55 = vpop.eup %2638  ;;  %2648 = vrcp.f32 %v420_v52  ;;  %v421_v4 = vadd.f32 1.0, %v2637_v53  ;;  %2352 = vmatprep.subr.bf16.mxu1 %v2562_v23 }
 0x135   :  { %2650 = vrcp.f32 %v418_v2  ;;  %v419_v57 = vadd.f32 1.0, %v2639_v55  ;;  %2304 = vmatprep.mubr.bf16.mxu1 %v472_v54 }
 0x136   :  { %v2641_v58 = vpop.eup %2640  ;;  %2652 = vrcp.f32 %v421_v4  ;;  %2305 = vmatmul.mubr.bf16.gmra.mrb[4].mxu1 %v473_v56 }
 0x137   :  { %v2643_v59 = vpop.eup %2642  ;;  %v3317_v60 = vmul.f32 %v2641_v58, %v3193_v22  ;;  %2654 = vrcp.f32 %v419_v57  ;;  %2353 = vmatpush3.bf16.msra.mxu1 %v2562_v23 }
 0x138   :  { %v2645_v62 = vpop.eup %2644  ;;  %v3320_v0 = vmul.f32 %v2643_v59, %v3200_v28  ;;  %2354 = vmatprep.subr.bf16.mxu1 %v2563_v27 }
 0x139   :  { %v2647_v1 = vpop.eup %2646  ;;  %464 = vst [vmem:[%s4182_s17 + $0x50] sm:$0xff] %v3317_v60  ;;  %v3327_v24 = vmul.f32 %v2645_v62, %v3208_v34 }
 0x13a   :  { %462 = vst [vmem:[%s4182_s17 + $0x40] sm:$0xff] %v3320_v0  ;;  %v3334_v22 = vmul.f32 %v2647_v1, %v3212_v40 }
 0x13b   :  { %465 = vst [vmem:[%s4182_s17 + $0x58] sm:$0xff] %v3327_v24  ;;  %v475_v34 = vpack.c.bf16 %v3327_v24, %v3317_v60  ;;  %2355 = vmatpush3.bf16.msra.mxu1 %v2563_v27 }
 0x13c   :  { %463 = vst [vmem:[%s4182_s17 + $0x48] sm:$0xff] %v3334_v22  ;;  %v474_v28 = vpack.c.bf16 %v3334_v22, %v3320_v0  ;;  %2356 = vmatprep.subr.bf16.mxu1 %v2564_v37 }
 0x13e   :  { %v2649_v5 = vpop.eup %2648  ;;  %2308 = vmatprep.mubr.bf16.mxu1 %v474_v28 }
 0x13f   :  { %v2651_v40 = vpop.eup %2650  ;;  %v3349_v6 = vmul.f32 %v2649_v5, %v3233_v3  ;;  %2309 = vmatmul.mubr.bf16.gmra.mrb[8].mxu1 %v475_v34 }
 0x140   :  { %v2653_v9 = vpop.eup %2652  ;;  %v3352_v10 = vmul.f32 %v2651_v40, %v3240_v7  ;;  %2357 = vmatpush3.bf16.msra.mxu1 %v2564_v37 }
 0x141   :  { %v2655_v11 = vpop.eup %2654  ;;  %468 = vst [vmem:[%s4182_s17 + $0x70] sm:$0xff] %v3349_v6  ;;  %v3359_v13 = vmul.f32 %v2653_v9, %v3243_v8  ;;  %2358 = vmatprep.subr.bf16.mxu1 %v2565_v39 }
 0x142   :  { %466 = vst [vmem:[%s4182_s17 + $0x60] sm:$0xff] %v3352_v10  ;;  %v3366_v3 = vmul.f32 %v2655_v11, %v3247_v12  ;;  %v2552_v12 = vld [vmem:[%s4208_s29] sm:$0xff]  }
 0x143   :  { %469 = vst [vmem:[%s4182_s17 + $0x78] sm:$0xff] %v3359_v13  ;;  %v477_v8 = vpack.c.bf16 %v3359_v13, %v3349_v6  ;;  %2316 = vmatprep.subr.bf16.mxu0 %v2552_v12 }
 0x144   :  { %467 = vst [vmem:[%s4182_s17 + $0x68] sm:$0xff] %v3366_v3  ;;  %v476_v7 = vpack.c.bf16 %v3366_v3, %v3352_v10  ;;  %2317 = vmatpush3.bf16.msra.mxu0 %v2552_v12  ;;  %2359 = vmatpush3.bf16.msra.mxu1 %v2565_v39 }
 0x145   :  { %2318 = vmatprep.subr.bf16.mxu0 %v2553_v26 }
 0x146   :  { %2312 = vmatprep.mubr.bf16.mxu1 %v476_v7 }
 0x147   :  { %2313 = vmatmul.mubr.bf16.gmra.mrb[12].mxu1 %v477_v8 }
 0x148   :  { %2319 = vmatpush3.bf16.msra.mxu0 %v2553_v26 }
 0x149   :  { %2320 = vmatprep.subr.bf16.mxu0 %v2554_v14 }
 0x14c   :  { %2321 = vmatpush3.bf16.msra.mxu0 %v2554_v14 }
 0x14d   :  { %2322 = vmatprep.subr.bf16.mxu0 %v2555_v15 }
 0x150   :  { %2323 = vmatpush3.bf16.msra.mxu0 %v2555_v15 }
 0x151   :  { %2324 = vmatprep.subr.bf16.mxu0 %v2556_v16 }
 0x154   :  { %2325 = vmatpush3.bf16.msra.mxu0 %v2556_v16 }
 0x155   :  { %2326 = vmatprep.subr.bf16.mxu0 %v2557_v17 }
 0x158   :  { %2327 = vmatpush3.bf16.msra.mxu0 %v2557_v17 }
 0x159   :  { %2328 = vmatprep.subr.bf16.mxu0 %v2558_v18 }
 0x15c   :  { %2329 = vmatpush3.bf16.msra.mxu0 %v2558_v18 }
 0x15d   :  { %2330 = vmatprep.subr.bf16.mxu0 %v2559_v20 }
 0x160   :  { %2331 = vmatpush3.bf16.msra.mxu0 %v2559_v20 }
 0x201   :  { %v2302_v42 = vpop.f32.mrb[0].mxu1 }
 0x202   :  { %v3428_v33 = vadd.f32 %v2302_v42, %v3425_v32  ;;  %v583_v44 = vpop.f32.mrb[1].mxu1 }
 0x203   :  { %v3431_v35 = vadd.f32 %v3425_v32, %v583_v44  ;;  %v2303_v36 = vpop.f32.mrb[2].mxu1 }
 0x204   :  { %v648_v38 = vsub.f32 0.0, %v3428_v33  ;;  %v3435_v41 = vadd.f32 %v2303_v36, %v3425_v32  ;;  %v586_v43 = vpop.f32.mrb[3].mxu1 }
 0x205   :  { %v646_v45 = vsub.f32 0.0, %v3431_v35  ;;  %v3439_v47 = vadd.f32 %v3425_v32, %v586_v43 }
 0x206   :  { %v666_v49 = vmul.f32 1.442695, %v648_v38  ;;  %v649_v51 = vsub.f32 0.0, %v3435_v41 }
 0x207   :  { %v662_v63 = vmul.f32 1.442695, %v646_v45  ;;  %v647_v52 = vsub.f32 0.0, %v3439_v47 }
 0x208   :  { %2656 = vpow2.f32 %v666_v49  ;;  %v668_v53 = vmul.f32 1.442695, %v649_v51 }
 0x209   :  { %2658 = vpow2.f32 %v662_v63  ;;  %v664_v2 = vmul.f32 1.442695, %v647_v52  ;;  %v2306_v54 = vpop.f32.mrb[4].mxu1 }
 0x20a   :  { %2660 = vpow2.f32 %v668_v53  ;;  %v3444_v55 = vadd.f32 %v2306_v54, %v3425_v32  ;;  %v599_v4 = vpop.f32.mrb[5].mxu1 }
 0x20b   :  { %2662 = vpow2.f32 %v664_v2  ;;  %v3447_v56 = vadd.f32 %v3425_v32, %v599_v4  ;;  %v2307_v57 = vpop.f32.mrb[6].mxu1 }
 0x20c   :  { %v652_v58 = vsub.f32 0.0, %v3444_v55  ;;  %v3451_v59 = vadd.f32 %v2307_v57, %v3425_v32  ;;  %v602_v62 = vpop.f32.mrb[7].mxu1 }
 0x20d   :  { %v650_v1 = vsub.f32 0.0, %v3447_v56  ;;  %v3455_v28 = vadd.f32 %v3425_v32, %v602_v62 }
 0x20e   :  { %v674_v34 = vmul.f32 1.442695, %v652_v58  ;;  %v653_v5 = vsub.f32 0.0, %v3451_v59 }
 0x20f   :  { %v670_v40 = vmul.f32 1.442695, %v650_v1  ;;  %v651_v9 = vsub.f32 0.0, %v3455_v28 }
 0x210   :  { %2664 = vpow2.f32 %v674_v34  ;;  %v676_v11 = vmul.f32 1.442695, %v653_v5 }
 0x211   :  { %2666 = vpow2.f32 %v670_v40  ;;  %v672_v7 = vmul.f32 1.442695, %v651_v9 }
 0x212   :  { %v2657_v8 = vpop.eup %2656  ;;  %2668 = vpow2.f32 %v676_v11  ;;  %v2310_v12 = vpop.f32.mrb[8].mxu1 }
 0x213   :  { %v2659_v26 = vpop.eup %2658  ;;  %v696_v14 = vadd.f32 1.0, %v2657_v8  ;;  %2670 = vpow2.f32 %v672_v7  ;;  %v3460_v15 = vadd.f32 %v2310_v12, %v3425_v32  ;;  %v615_v16 = vpop.f32.mrb[9].mxu1 }
 0x214   :  { %v2661_v17 = vpop.eup %2660  ;;  %v694_v18 = vadd.f32 1.0, %v2659_v26  ;;  %v3463_v20 = vadd.f32 %v3425_v32, %v615_v16  ;;  %v2311_v21 = vpop.f32.mrb[10].mxu1 }
 0x215   :  { %v2663_v29 = vpop.eup %2662  ;;  %2672 = vrcp.f32 %v696_v14  ;;  %v697_v23 = vadd.f32 1.0, %v2661_v17  ;;  %v656_v27 = vsub.f32 0.0, %v3460_v15  ;;  %v3467_v37 = vadd.f32 %v2311_v21, %v3425_v32  ;;  %v618_v39 = vpop.f32.mrb[11].mxu1 }
 0x216   :  { %2674 = vrcp.f32 %v694_v18  ;;  %v695_v42 = vadd.f32 1.0, %v2663_v29  ;;  %v654_v44 = vsub.f32 0.0, %v3463_v20  ;;  %v3471_v36 = vadd.f32 %v3425_v32, %v618_v39 }
 0x217   :  { %2676 = vrcp.f32 %v697_v23  ;;  %v682_v38 = vmul.f32 1.442695, %v656_v27  ;;  %v657_v43 = vsub.f32 0.0, %v3467_v37 }
 0x218   :  { %2678 = vrcp.f32 %v695_v42  ;;  %v678_v45 = vmul.f32 1.442695, %v654_v44  ;;  %v655_v49 = vsub.f32 0.0, %v3471_v36 }
 0x219   :  { %2680 = vpow2.f32 %v682_v38  ;;  %v684_v51 = vmul.f32 1.442695, %v657_v43 }
 0x21a   :  { %v2665_v63 = vpop.eup %2664  ;;  %2682 = vpow2.f32 %v678_v45  ;;  %v680_v52 = vmul.f32 1.442695, %v655_v49  ;;  %v2314_v53 = vpop.f32.mrb[12].mxu1 }
 0x21b   :  { %v2667_v2 = vpop.eup %2666  ;;  %v700_v54 = vadd.f32 1.0, %v2665_v63  ;;  %2684 = vpow2.f32 %v684_v51  ;;  %v3476_v4 = vadd.f32 %v2314_v53, %v3425_v32  ;;  %v631_v57 = vpop.f32.mrb[13].mxu1 }
 0x21c   :  { %v2669_v58 = vpop.eup %2668  ;;  %v698_v62 = vadd.f32 1.0, %v2667_v2  ;;  %2686 = vpow2.f32 %v680_v52  ;;  %v3479_v1 = vadd.f32 %v3425_v32, %v631_v57  ;;  %v2315_v34 = vpop.f32.mrb[14].mxu1 }
 0x21d   :  { %v2671_v5 = vpop.eup %2670  ;;  %2688 = vrcp.f32 %v700_v54  ;;  %v701_v40 = vadd.f32 1.0, %v2669_v58  ;;  %v660_v9 = vsub.f32 0.0, %v3476_v4  ;;  %v3483_v11 = vadd.f32 %v2315_v34, %v3425_v32  ;;  %v634_v7 = vpop.f32.mrb[15].mxu1 }
 0x21e   :  { %2690 = vrcp.f32 %v698_v62  ;;  %v699_v8 = vadd.f32 1.0, %v2671_v5  ;;  %v658_v12 = vsub.f32 0.0, %v3479_v1  ;;  %v3487_v26 = vadd.f32 %v3425_v32, %v634_v7 }
 0x21f   :  { %v2673_v14 = vpop.eup %2672  ;;  %2692 = vrcp.f32 %v701_v40  ;;  %v690_v16 = vmul.f32 1.442695, %v660_v9  ;;  %v661_v17 = vsub.f32 0.0, %v3483_v11 }
 0x220   :  { %v2675_v18 = vpop.eup %2674  ;;  %2694 = vrcp.f32 %v699_v8  ;;  %v686_v21 = vmul.f32 1.442695, %v658_v12  ;;  %v659_v29 = vsub.f32 0.0, %v3487_v26  ;;  %v728_v42 = vmul.f32 %v2673_v14, %v3428_v33 }
 0x221   :  { %v2677_v23 = vpop.eup %2676  ;;  %2696 = vpow2.f32 %v690_v16  ;;  %v692_v27 = vmul.f32 1.442695, %v661_v17  ;;  %v726_v43 = vmul.f32 %v2675_v18, %v3431_v35 }
 0x222   :  { %v2679_v39 = vpop.eup %2678  ;;  %v729_v44 = vmul.f32 %v2677_v23, %v3435_v41  ;;  %2698 = vpow2.f32 %v686_v21  ;;  %v688_v32 = vmul.f32 1.442695, %v659_v29 }
 0x223   :  { %v2681_v38 = vpop.eup %2680  ;;  %v727_v45 = vmul.f32 %v2679_v39, %v3439_v47  ;;  %2700 = vpow2.f32 %v692_v27 }
 0x224   :  { %v2683_v49 = vpop.eup %2682  ;;  %v743_v51 = vpack.c.bf16 %v729_v44, %v728_v42  ;;  %v704_v63 = vadd.f32 1.0, %v2681_v38  ;;  %2702 = vpow2.f32 %v688_v32 }
 0x225   :  { %v2685_v52 = vpop.eup %2684  ;;  %v702_v53 = vadd.f32 1.0, %v2683_v49  ;;  %v742_v2 = vpack.c.bf16 %v727_v45, %v726_v43 }
 0x226   :  { %v2687_v54 = vpop.eup %2686  ;;  %2704 = vrcp.f32 %v704_v63  ;;  %v705_v33 = vadd.f32 1.0, %v2685_v52 }
 0x227   :  { %v2689_v57 = vpop.eup %2688  ;;  %2706 = vrcp.f32 %v702_v53  ;;  %v703_v41 = vadd.f32 1.0, %v2687_v54  ;;  %2332 = vmatprep.mubr.bf16.mxu0 %v742_v2 }
 0x228   :  { %v2691_v58 = vpop.eup %2690  ;;  %2708 = vrcp.f32 %v705_v33  ;;  %2333 = vmatmul.mubr.bf16.vlgmr.msra.gmra.mrb[16].mxu0 %v743_v51  ;;  %v732_v62 = vmul.f32 %v2689_v57, %v3444_v55 }
 0x229   :  { %v2693_v35 = vpop.eup %2692  ;;  %2710 = vrcp.f32 %v703_v41  ;;  %v730_v40 = vmul.f32 %v2691_v58, %v3447_v56 }
 0x22a   :  { %v2695_v47 = vpop.eup %2694  ;;  %v733_v34 = vmul.f32 %v2693_v35, %v3451_v59 }
 0x22b   :  { %v2697_v5 = vpop.eup %2696  ;;  %v731_v9 = vmul.f32 %v2695_v47, %v3455_v28 }
 0x22c   :  { %v2699_v7 = vpop.eup %2698  ;;  %v708_v8 = vadd.f32 1.0, %v2697_v5  ;;  %v745_v12 = vpack.c.bf16 %v733_v34, %v732_v62 }
 0x22d   :  { %v2701_v14 = vpop.eup %2700  ;;  %v706_v16 = vadd.f32 1.0, %v2699_v7  ;;  %v744_v17 = vpack.c.bf16 %v731_v9, %v730_v40 }
 0x22e   :  { %v2703_v18 = vpop.eup %2702  ;;  %2712 = vrcp.f32 %v708_v8  ;;  %v709_v21 = vadd.f32 1.0, %v2701_v14 }
 0x22f   :  { %2714 = vrcp.f32 %v706_v16  ;;  %v707_v29 = vadd.f32 1.0, %v2703_v18  ;;  %2336 = vmatprep.mubr.bf16.mxu0 %v744_v17 }
 0x230   :  { %v2705_v55 = vpop.eup %2704  ;;  %2716 = vrcp.f32 %v709_v21  ;;  %2337 = vmatmul.mubr.bf16.gmra.mrb[20].mxu0 %v745_v12 }
 0x231   :  { %v2707_v59 = vpop.eup %2706  ;;  %2718 = vrcp.f32 %v707_v29  ;;  %v736_v28 = vmul.f32 %v2705_v55, %v3460_v15 }
 0x232   :  { %v2709_v56 = vpop.eup %2708  ;;  %v734_v39 = vmul.f32 %v2707_v59, %v3463_v20 }
 0x233   :  { %v2711_v23 = vpop.eup %2710  ;;  %v737_v27 = vmul.f32 %v2709_v56, %v3467_v37 }
 0x234   :  { %v735_v42 = vmul.f32 %v2711_v23, %v3471_v36  ;;  %v2566_v36 = vld [vmem:[%s4204_s6 + $0x70] sm:$0xff]  }
 0x235   :  { %v747_v44 = vpack.c.bf16 %v737_v27, %v736_v28  ;;  %2360 = vmatprep.subr.bf16.mxu1 %v2566_v36 }
 0x236   :  { %v746_v32 = vpack.c.bf16 %v735_v42, %v734_v39  ;;  %2361 = vmatpush3.bf16.msra.mxu1 %v2566_v36  ;;  %v2573_v36 = vld [vmem:[%s4208_s29 + $0x68] sm:$0xff]  }
 0x238   :  { %v2713_v38 = vpop.eup %2712  ;;  %2340 = vmatprep.mubr.bf16.mxu0 %v746_v32 }
 0x239   :  { %v2715_v43 = vpop.eup %2714  ;;  %2341 = vmatmul.mubr.bf16.gmra.mrb[24].mxu0 %v747_v44  ;;  %v740_v51 = vmul.f32 %v2713_v38, %v3476_v4  ;;  %v2567_v4 = vld [vmem:[%s4204_s6 + $0x78] sm:$0xff]  }
 0x23a   :  { %v2717_v45 = vpop.eup %2716  ;;  %v738_v15 = vmul.f32 %v2715_v43, %v3479_v1  ;;  %2362 = vmatprep.subr.bf16.mxu1 %v2567_v4  ;;  %v3516_v1 = vld [vmem:[%s4173_s8] ss:$0 sm:$0xff] }
 0x23b   :  { %v2719_v49 = vpop.eup %2718  ;;  %v741_v63 = vmul.f32 %v2717_v45, %v3483_v11  ;;  %2363 = vmatpush3.bf16.msra.mxu1 %v2567_v4  ;;  %v2574_v4 = vld [vmem:[%s4208_s29 + $0x70] sm:$0xff]  }
 0x23c   :  { %v739_v37 = vmul.f32 %v2719_v49, %v3487_v26 }
 0x23d   :  { %v749_v52 = vpack.c.bf16 %v741_v63, %v740_v51 }
 0x23e   :  { %v748_v20 = vpack.c.bf16 %v739_v37, %v738_v15  ;;  %v2569_v15 = vld [vmem:[%s4208_s29 + $0x48] sm:$0xff]   ;;  %v2570_v37 = vld [vmem:[%s4208_s29 + $0x50] sm:$0xff]  }
 0x240   :  { %2344 = vmatprep.mubr.bf16.mxu0 %v748_v20  ;;  %v2572_v20 = vld [vmem:[%s4208_s29 + $0x60] sm:$0xff]  }
 0x241   :  { %2345 = vmatmul.mubr.bf16.gmra.mrb[28].mxu0 %v749_v52  ;;  %v2571_v52 = vld [vmem:[%s4208_s29 + $0x58] sm:$0xff]  }
 0x2fb   :  { %v2334_v11 = vpop.f32.mrb[16].mxu0 }
 0x2fc   :  { %v864_v26 = vadd.f32 %v2334_v11, %v3516_v1  ;;  %v855_v53 = vpop.f32.mrb[17].mxu0  ;;  %v2576_v11 = vld [vmem:[%s4174_s9] sm:$0xff]  }
 0x2fd   :  { %v856_v2 = vadd.f32 %v3516_v1, %v855_v53  ;;  %v2335_v54 = vpop.f32.mrb[18].mxu0  ;;  %2412 = vmatprep.subr.bf16.mxu1 %v2576_v11  ;;  %v2578_v53 = vld [vmem:[%s4174_s9 + $0x10] sm:$0xff]  }
 0x2fe   :  { %v3521_v33 = vadd.f32 %v864_v26, %v3253_v19  ;;  %v867_v57 = vadd.f32 %v2335_v54, %v3516_v1  ;;  %v858_v41 = vpop.f32.mrb[19].mxu0  ;;  %v2577_v26 = vld [vmem:[%s4174_s9 + $0x8] sm:$0xff]   ;;  %v2580_v54 = vld [vmem:[%s4174_s9 + $0x20] sm:$0xff]  }
 0x2ff   :  { %v3525_v58 = vadd.f32 %v856_v2, %v3256_v25  ;;  %v859_v35 = vadd.f32 %v3516_v1, %v858_v41  ;;  %v2579_v2 = vld [vmem:[%s4174_s9 + $0x18] sm:$0xff]   ;;  %v3707_v41 = vld [vmem:[%s4209_s27 + $0x1] ss:$0 sm:$0xff] }
 0x300   :  { %936 = vst [vmem:[%s4183_s18 + $0x10] sm:$0xff] %v3521_v33  ;;  %v3533_v47 = vadd.f32 %v867_v57, %v3263_v30  ;;  %v2581_v57 = vld [vmem:[%s4174_s9 + $0x28] sm:$0xff]  }
 0x301   :  { %934 = vst [vmem:[%s4183_s18] sm:$0xff] %v3525_v58  ;;  %v3540_v19 = vadd.f32 %v859_v35, %v3266_v31 }
 0x302   :  { %937 = vst [vmem:[%s4183_s18 + $0x18] sm:$0xff] %v3533_v47  ;;  %v951_v62 = vpack.c.bf16 %v3533_v47, %v3521_v33 }
 0x303   :  { %935 = vst [vmem:[%s4183_s18 + $0x8] sm:$0xff] %v3540_v19  ;;  %v2338_v25 = vpop.f32.mrb[20].mxu0  ;;  %v950_v30 = vpack.c.bf16 %v3540_v19, %v3525_v58 }
 0x304   :  { %v880_v31 = vadd.f32 %v2338_v25, %v3516_v1  ;;  %v871_v34 = vpop.f32.mrb[21].mxu0 }
 0x305   :  { %v872_v5 = vadd.f32 %v3516_v1, %v871_v34  ;;  %v2339_v40 = vpop.f32.mrb[22].mxu0  ;;  %2364 = vmatprep.mubr.bf16.mxu1 %v950_v30 }
 0x306   :  { %v3557_v9 = vadd.f32 %v880_v31, %v3285_v46  ;;  %v883_v7 = vadd.f32 %v2339_v40, %v3516_v1  ;;  %v874_v8 = vpop.f32.mrb[23].mxu0  ;;  %2365 = vmatmul.mubr.bf16.vlgmr.msra.gmra.mrb[16].mxu1 %v951_v62 }
 0x307   :  { %v3561_v12 = vadd.f32 %v872_v5, %v3288_v48  ;;  %v875_v14 = vadd.f32 %v3516_v1, %v874_v8  ;;  %2413 = vmatpush3.bf16.msra.mxu1 %v2576_v11 }
 0x308   :  { %940 = vst [vmem:[%s4183_s18 + $0x30] sm:$0xff] %v3557_v9  ;;  %v3569_v16 = vadd.f32 %v883_v7, %v3295_v50  ;;  %2414 = vmatprep.subr.bf16.mxu1 %v2577_v26 }
 0x309   :  { %938 = vst [vmem:[%s4183_s18 + $0x20] sm:$0xff] %v3561_v12  ;;  %v3576_v46 = vadd.f32 %v875_v14, %v3302_v61 }
 0x30a   :  { %941 = vst [vmem:[%s4183_s18 + $0x38] sm:$0xff] %v3569_v16  ;;  %v953_v17 = vpack.c.bf16 %v3569_v16, %v3557_v9 }
 0x30b   :  { %939 = vst [vmem:[%s4183_s18 + $0x28] sm:$0xff] %v3576_v46  ;;  %v952_v48 = vpack.c.bf16 %v3576_v46, %v3561_v12  ;;  %2415 = vmatpush3.bf16.msra.mxu1 %v2577_v26 }
 0x30c   :  { %v2342_v50 = vpop.f32.mrb[24].mxu0  ;;  %2416 = vmatprep.subr.bf16.mxu1 %v2578_v53 }
 0x30d   :  { %v896_v61 = vadd.f32 %v2342_v50, %v3516_v1  ;;  %v887_v18 = vpop.f32.mrb[25].mxu0  ;;  %2368 = vmatprep.mubr.bf16.mxu1 %v952_v48 }
 0x30e   :  { %v888_v21 = vadd.f32 %v3516_v1, %v887_v18  ;;  %v2343_v29 = vpop.f32.mrb[26].mxu0  ;;  %2369 = vmatmul.mubr.bf16.gmra.mrb[20].mxu1 %v953_v17 }
 0x30f   :  { %v3593_v55 = vadd.f32 %v896_v61, %v3317_v60  ;;  %v899_v59 = vadd.f32 %v2343_v29, %v3516_v1  ;;  %v890_v56 = vpop.f32.mrb[27].mxu0  ;;  %2417 = vmatpush3.bf16.msra.mxu1 %v2578_v53 }
 0x310   :  { %v3597_v23 = vadd.f32 %v888_v21, %v3320_v0  ;;  %v891_v28 = vadd.f32 %v3516_v1, %v890_v56  ;;  %2418 = vmatprep.subr.bf16.mxu1 %v2579_v2 }
 0x311   :  { %944 = vst [vmem:[%s4183_s18 + $0x50] sm:$0xff] %v3593_v55  ;;  %v3605_v27 = vadd.f32 %v899_v59, %v3327_v24 }
 0x312   :  { %942 = vst [vmem:[%s4183_s18 + $0x40] sm:$0xff] %v3597_v23  ;;  %v3612_v60 = vadd.f32 %v891_v28, %v3334_v22 }
 0x313   :  { %945 = vst [vmem:[%s4183_s18 + $0x58] sm:$0xff] %v3605_v27  ;;  %v955_v22 = vpack.c.bf16 %v3605_v27, %v3593_v55  ;;  %2419 = vmatpush3.bf16.msra.mxu1 %v2579_v2 }
 0x314   :  { %943 = vst [vmem:[%s4183_s18 + $0x48] sm:$0xff] %v3612_v60  ;;  %v2346_v0 = vpop.f32.mrb[28].mxu0  ;;  %v954_v24 = vpack.c.bf16 %v3612_v60, %v3597_v23  ;;  %2420 = vmatprep.subr.bf16.mxu1 %v2580_v54 }
 0x315   :  { %v912_v39 = vadd.f32 %v2346_v0, %v3516_v1  ;;  %v903_v42 = vpop.f32.mrb[29].mxu0 }
 0x316   :  { %v904_v44 = vadd.f32 %v3516_v1, %v903_v42  ;;  %v2347_v32 = vpop.f32.mrb[30].mxu0  ;;  %2372 = vmatprep.mubr.bf16.mxu1 %v954_v24 }
 0x317   :  { %v3629_v38 = vadd.f32 %v912_v39, %v3349_v6  ;;  %v915_v43 = vadd.f32 %v2347_v32, %v3516_v1  ;;  %v906_v45 = vpop.f32.mrb[31].mxu0  ;;  %2373 = vmatmul.mubr.bf16.gmra.mrb[24].mxu1 %v955_v22 }
 0x318   :  { %v3633_v49 = vadd.f32 %v904_v44, %v3352_v10  ;;  %v907_v51 = vadd.f32 %v3516_v1, %v906_v45  ;;  %v2575_v1 = vld [vmem:[%s4208_s29 + $0x78] sm:$0xff]   ;;  %2421 = vmatpush3.bf16.msra.mxu1 %v2580_v54 }
 0x319   :  { %948 = vst [vmem:[%s4183_s18 + $0x70] sm:$0xff] %v3629_v38  ;;  %v3641_v63 = vadd.f32 %v915_v43, %v3359_v13  ;;  %2422 = vmatprep.subr.bf16.mxu1 %v2581_v57 }
 0x31a   :  { %946 = vst [vmem:[%s4183_s18 + $0x60] sm:$0xff] %v3633_v49  ;;  %v3648_v6 = vadd.f32 %v907_v51, %v3366_v3  ;;  %v2568_v3 = vld [vmem:[%s4208_s29 + $0x40] sm:$0xff]  }
 0x31b   :  { %949 = vst [vmem:[%s4183_s18 + $0x78] sm:$0xff] %v3641_v63  ;;  %v957_v13 = vpack.c.bf16 %v3641_v63, %v3629_v38  ;;  %2380 = vmatprep.subr.bf16.mxu0 %v2568_v3 }
 0x31c   :  { %947 = vst [vmem:[%s4183_s18 + $0x68] sm:$0xff] %v3648_v6  ;;  %v956_v10 = vpack.c.bf16 %v3648_v6, %v3633_v49  ;;  %2381 = vmatpush3.bf16.msra.mxu0 %v2568_v3  ;;  %2423 = vmatpush3.bf16.msra.mxu1 %v2581_v57 }
 0x31d   :  { %2382 = vmatprep.subr.bf16.mxu0 %v2569_v15 }
 0x31e   :  { %2376 = vmatprep.mubr.bf16.mxu1 %v956_v10 }
 0x31f   :  { %2377 = vmatmul.mubr.bf16.gmra.mrb[28].mxu1 %v957_v13 }
 0x320   :  { %2383 = vmatpush3.bf16.msra.mxu0 %v2569_v15 }
 0x321   :  { %2384 = vmatprep.subr.bf16.mxu0 %v2570_v37 }
 0x324   :  { %2385 = vmatpush3.bf16.msra.mxu0 %v2570_v37 }
 0x325   :  { %2386 = vmatprep.subr.bf16.mxu0 %v2571_v52 }
 0x328   :  { %2387 = vmatpush3.bf16.msra.mxu0 %v2571_v52 }
 0x329   :  { %2388 = vmatprep.subr.bf16.mxu0 %v2572_v20 }
 0x32c   :  { %2389 = vmatpush3.bf16.msra.mxu0 %v2572_v20 }
 0x32d   :  { %2390 = vmatprep.subr.bf16.mxu0 %v2573_v36 }
 0x330   :  { %2391 = vmatpush3.bf16.msra.mxu0 %v2573_v36 }
 0x331   :  { %2392 = vmatprep.subr.bf16.mxu0 %v2574_v4 }
 0x334   :  { %2393 = vmatpush3.bf16.msra.mxu0 %v2574_v4 }
 0x335   :  { %2394 = vmatprep.subr.bf16.mxu0 %v2575_v1 }
 0x338   :  { %2395 = vmatpush3.bf16.msra.mxu0 %v2575_v1 }
 0x3d9   :  { %v2366_v35 = vpop.f32.mrb[16].mxu1 }
 0x3da   :  { %v3710_v25 = vadd.f32 %v2366_v35, %v3707_v41  ;;  %v1065_v30 = vpop.f32.mrb[17].mxu1 }
 0x3db   :  { %v3713_v62 = vadd.f32 %v3707_v41, %v1065_v30  ;;  %v2367_v31 = vpop.f32.mrb[18].mxu1 }
 0x3dc   :  { %v1130_v34 = vsub.f32 0.0, %v3710_v25  ;;  %v3717_v5 = vadd.f32 %v2367_v31, %v3707_v41  ;;  %v1068_v40 = vpop.f32.mrb[19].mxu1 }
 0x3dd   :  { %v1128_v7 = vsub.f32 0.0, %v3713_v62  ;;  %v3721_v8 = vadd.f32 %v3707_v41, %v1068_v40 }
 0x3de   :  { %v1148_v14 = vmul.f32 1.442695, %v1130_v34  ;;  %v1131_v48 = vsub.f32 0.0, %v3717_v5 }
 0x3df   :  { %v1144_v50 = vmul.f32 1.442695, %v1128_v7  ;;  %v1129_v17 = vsub.f32 0.0, %v3721_v8 }
 0x3e0   :  { %2720 = vpow2.f32 %v1148_v14  ;;  %v1150_v61 = vmul.f32 1.442695, %v1131_v48 }
 0x3e1   :  { %2722 = vpow2.f32 %v1144_v50  ;;  %v1146_v18 = vmul.f32 1.442695, %v1129_v17  ;;  %v2370_v21 = vpop.f32.mrb[20].mxu1 }
 0x3e2   :  { %2724 = vpow2.f32 %v1150_v61  ;;  %v3726_v29 = vadd.f32 %v2370_v21, %v3707_v41  ;;  %v1081_v59 = vpop.f32.mrb[21].mxu1 }
 0x3e3   :  { %2726 = vpow2.f32 %v1146_v18  ;;  %v3729_v56 = vadd.f32 %v3707_v41, %v1081_v59  ;;  %v2371_v28 = vpop.f32.mrb[22].mxu1 }
 0x3e4   :  { %v1134_v0 = vsub.f32 0.0, %v3726_v29  ;;  %v3733_v24 = vadd.f32 %v2371_v28, %v3707_v41  ;;  %v1084_v39 = vpop.f32.mrb[23].mxu1 }
 0x3e5   :  { %v1132_v42 = vsub.f32 0.0, %v3729_v56  ;;  %v3737_v22 = vadd.f32 %v3707_v41, %v1084_v39 }
 0x3e6   :  { %v1156_v44 = vmul.f32 1.442695, %v1134_v0  ;;  %v1135_v32 = vsub.f32 0.0, %v3733_v24 }
 0x3e7   :  { %v1152_v43 = vmul.f32 1.442695, %v1132_v42  ;;  %v1133_v45 = vsub.f32 0.0, %v3737_v22 }
 0x3e8   :  { %2728 = vpow2.f32 %v1156_v44  ;;  %v1158_v51 = vmul.f32 1.442695, %v1135_v32 }
 0x3e9   :  { %2730 = vpow2.f32 %v1152_v43  ;;  %v1154_v10 = vmul.f32 1.442695, %v1133_v45 }
 0x3ea   :  { %v2721_v13 = vpop.eup %2720  ;;  %2732 = vpow2.f32 %v1158_v51  ;;  %v2374_v3 = vpop.f32.mrb[24].mxu1 }
 0x3eb   :  { %v2723_v15 = vpop.eup %2722  ;;  %v1178_v37 = vadd.f32 1.0, %v2721_v13  ;;  %2734 = vpow2.f32 %v1154_v10  ;;  %v3742_v52 = vadd.f32 %v2374_v3, %v3707_v41  ;;  %v1097_v20 = vpop.f32.mrb[25].mxu1 }
 0x3ec   :  { %v2725_v36 = vpop.eup %2724  ;;  %v1176_v4 = vadd.f32 1.0, %v2723_v15  ;;  %v3745_v1 = vadd.f32 %v3707_v41, %v1097_v20  ;;  %v2375_v11 = vpop.f32.mrb[26].mxu1 }
 0x3ed   :  { %v2727_v26 = vpop.eup %2726  ;;  %2736 = vrcp.f32 %v1178_v37  ;;  %v1179_v53 = vadd.f32 1.0, %v2725_v36  ;;  %v1138_v2 = vsub.f32 0.0, %v3742_v52  ;;  %v3749_v54 = vadd.f32 %v2375_v11, %v3707_v41  ;;  %v1100_v57 = vpop.f32.mrb[27].mxu1 }
 0x3ee   :  { %2738 = vrcp.f32 %v1176_v4  ;;  %v1177_v35 = vadd.f32 1.0, %v2727_v26  ;;  %v1136_v30 = vsub.f32 0.0, %v3745_v1  ;;  %v3753_v31 = vadd.f32 %v3707_v41, %v1100_v57 }
 0x3ef   :  { %2740 = vrcp.f32 %v1179_v53  ;;  %v1164_v34 = vmul.f32 1.442695, %v1138_v2  ;;  %v1139_v40 = vsub.f32 0.0, %v3749_v54 }
 0x3f0   :  { %2742 = vrcp.f32 %v1177_v35  ;;  %v1160_v7 = vmul.f32 1.442695, %v1136_v30  ;;  %v1137_v14 = vsub.f32 0.0, %v3753_v31 }
 0x3f1   :  { %2744 = vpow2.f32 %v1164_v34  ;;  %v1166_v48 = vmul.f32 1.442695, %v1139_v40 }
 0x3f2   :  { %v2729_v50 = vpop.eup %2728  ;;  %2746 = vpow2.f32 %v1160_v7  ;;  %v1162_v17 = vmul.f32 1.442695, %v1137_v14  ;;  %v2378_v61 = vpop.f32.mrb[28].mxu1 }
 0x3f3   :  { %v2731_v18 = vpop.eup %2730  ;;  %v1182_v21 = vadd.f32 1.0, %v2729_v50  ;;  %2748 = vpow2.f32 %v1166_v48  ;;  %v3758_v59 = vadd.f32 %v2378_v61, %v3707_v41  ;;  %v1113_v28 = vpop.f32.mrb[29].mxu1 }
 0x3f4   :  { %v2733_v0 = vpop.eup %2732  ;;  %v1180_v39 = vadd.f32 1.0, %v2731_v18  ;;  %2750 = vpow2.f32 %v1162_v17  ;;  %v3761_v42 = vadd.f32 %v3707_v41, %v1113_v28  ;;  %v2379_v44 = vpop.f32.mrb[30].mxu1 }
 0x3f5   :  { %v2735_v32 = vpop.eup %2734  ;;  %2752 = vrcp.f32 %v1182_v21  ;;  %v1183_v43 = vadd.f32 1.0, %v2733_v0  ;;  %v1142_v45 = vsub.f32 0.0, %v3758_v59  ;;  %v3765_v51 = vadd.f32 %v2379_v44, %v3707_v41  ;;  %v1116_v10 = vpop.f32.mrb[31].mxu1 }
 0x3f6   :  { %2754 = vrcp.f32 %v1180_v39  ;;  %v1181_v13 = vadd.f32 1.0, %v2735_v32  ;;  %v1140_v3 = vsub.f32 0.0, %v3761_v42  ;;  %v3769_v15 = vadd.f32 %v3707_v41, %v1116_v10 }
 0x3f7   :  { %v2737_v37 = vpop.eup %2736  ;;  %2756 = vrcp.f32 %v1183_v43  ;;  %v1172_v20 = vmul.f32 1.442695, %v1142_v45  ;;  %v1143_v36 = vsub.f32 0.0, %v3765_v51 }
 0x3f8   :  { %v2739_v4 = vpop.eup %2738  ;;  %2758 = vrcp.f32 %v1181_v13  ;;  %v1168_v11 = vmul.f32 1.442695, %v1140_v3  ;;  %v1141_v26 = vsub.f32 0.0, %v3769_v15  ;;  %v1210_v35 = vmul.f32 %v2737_v37, %v3710_v25 }
 0x3f9   :  { %v2741_v53 = vpop.eup %2740  ;;  %2760 = vpow2.f32 %v1172_v20  ;;  %v1174_v2 = vmul.f32 1.442695, %v1143_v36  ;;  %v1208_v40 = vmul.f32 %v2739_v4, %v3713_v62 }
 0x3fa   :  { %v2743_v57 = vpop.eup %2742  ;;  %v1211_v30 = vmul.f32 %v2741_v53, %v3717_v5  ;;  %2762 = vpow2.f32 %v1168_v11  ;;  %v1170_v41 = vmul.f32 1.442695, %v1141_v26 }
 0x3fb   :  { %v2745_v34 = vpop.eup %2744  ;;  %v1209_v7 = vmul.f32 %v2743_v57, %v3721_v8  ;;  %2764 = vpow2.f32 %v1174_v2 }
 0x3fc   :  { %v2747_v14 = vpop.eup %2746  ;;  %v1225_v48 = vpack.c.bf16 %v1211_v30, %v1210_v35  ;;  %v1186_v50 = vadd.f32 1.0, %v2745_v34  ;;  %2766 = vpow2.f32 %v1170_v41 }
 0x3fd   :  { %v2749_v17 = vpop.eup %2748  ;;  %v1184_v61 = vadd.f32 1.0, %v2747_v14  ;;  %v1224_v18 = vpack.c.bf16 %v1209_v7, %v1208_v40 }
 0x3fe   :  { %v2751_v21 = vpop.eup %2750  ;;  %2768 = vrcp.f32 %v1186_v50  ;;  %v1187_v25 = vadd.f32 1.0, %v2749_v17 }
 0x3ff   :  { %v2753_v28 = vpop.eup %2752  ;;  %2770 = vrcp.f32 %v1184_v61  ;;  %v1185_v5 = vadd.f32 1.0, %v2751_v21  ;;  %2396 = vmatprep.mubr.bf16.mxu0 %v1224_v18 }
 0x400   :  { %v2755_v0 = vpop.eup %2754  ;;  %2772 = vrcp.f32 %v1187_v25  ;;  %2397 = vmatmul.mubr.bf16.vlgmr.msra.gmra.mrb[32].mxu0 %v1225_v48  ;;  %v1214_v39 = vmul.f32 %v2753_v28, %v3726_v29 }
 0x401   :  { %v2757_v62 = vpop.eup %2756  ;;  %2774 = vrcp.f32 %v1185_v5  ;;  %v1212_v43 = vmul.f32 %v2755_v0, %v3729_v56 }
 0x402   :  { %v2759_v8 = vpop.eup %2758  ;;  %v1215_v44 = vmul.f32 %v2757_v62, %v3733_v24 }
 0x403   :  { %v2761_v32 = vpop.eup %2760  ;;  %v1213_v45 = vmul.f32 %v2759_v8, %v3737_v22 }
 0x404   :  { %v2763_v10 = vpop.eup %2762  ;;  %v1190_v13 = vadd.f32 1.0, %v2761_v32  ;;  %v1227_v3 = vpack.c.bf16 %v1215_v44, %v1214_v39 }
 0x405   :  { %v2765_v37 = vpop.eup %2764  ;;  %v1188_v20 = vadd.f32 1.0, %v2763_v10  ;;  %v1226_v36 = vpack.c.bf16 %v1213_v45, %v1212_v43 }
 0x406   :  { %v2767_v4 = vpop.eup %2766  ;;  %2776 = vrcp.f32 %v1190_v13  ;;  %v1191_v11 = vadd.f32 1.0, %v2765_v37 }
 0x407   :  { %2778 = vrcp.f32 %v1188_v20  ;;  %v1189_v26 = vadd.f32 1.0, %v2767_v4  ;;  %2400 = vmatprep.mubr.bf16.mxu0 %v1226_v36 }
 0x408   :  { %v2769_v29 = vpop.eup %2768  ;;  %2780 = vrcp.f32 %v1191_v11  ;;  %2401 = vmatmul.mubr.bf16.gmra.mrb[36].mxu0 %v1227_v3 }
 0x409   :  { %v2771_v24 = vpop.eup %2770  ;;  %2782 = vrcp.f32 %v1189_v26  ;;  %v1218_v22 = vmul.f32 %v2769_v29, %v3742_v52 }
 0x40a   :  { %v2773_v56 = vpop.eup %2772  ;;  %v1216_v57 = vmul.f32 %v2771_v24, %v3745_v1 }
 0x40b   :  { %v2775_v53 = vpop.eup %2774  ;;  %v1219_v2 = vmul.f32 %v2773_v56, %v3749_v54 }
 0x40c   :  { %v1217_v35 = vmul.f32 %v2775_v53, %v3753_v31  ;;  %v2582_v31 = vld [vmem:[%s4174_s9 + $0x30] sm:$0xff]  }
 0x40d   :  { %v1229_v30 = vpack.c.bf16 %v1219_v2, %v1218_v22  ;;  %2424 = vmatprep.subr.bf16.mxu1 %v2582_v31 }
 0x40e   :  { %v1228_v41 = vpack.c.bf16 %v1217_v35, %v1216_v57  ;;  %2425 = vmatpush3.bf16.msra.mxu1 %v2582_v31  ;;  %v2587_v31 = vld [vmem:[%s4178_s13 + $0x18] sm:$0xff]  }
 0x410   :  { %v2777_v34 = vpop.eup %2776  ;;  %2404 = vmatprep.mubr.bf16.mxu0 %v1228_v41 }
 0x411   :  { %v2779_v40 = vpop.eup %2778  ;;  %2405 = vmatmul.mubr.bf16.gmra.mrb[40].mxu0 %v1229_v30  ;;  %v1222_v48 = vmul.f32 %v2777_v34, %v3758_v59  ;;  %v2583_v59 = vld [vmem:[%s4174_s9 + $0x38] sm:$0xff]  }
 0x412   :  { %v2781_v7 = vpop.eup %2780  ;;  %v1220_v52 = vmul.f32 %v2779_v40, %v3761_v42  ;;  %2426 = vmatprep.subr.bf16.mxu1 %v2583_v59  ;;  %v3798_v42 = vld [vmem:[%s4173_s8 + $0x1] ss:$0 sm:$0xff] }
 0x413   :  { %v2783_v14 = vpop.eup %2782  ;;  %v1223_v50 = vmul.f32 %v2781_v7, %v3765_v51  ;;  %2427 = vmatpush3.bf16.msra.mxu1 %v2583_v59  ;;  %v2588_v59 = vld [vmem:[%s4178_s13 + $0x20] sm:$0xff]  }
 0x414   :  { %v1221_v54 = vmul.f32 %v2783_v14, %v3769_v15 }
 0x415   :  { %v1231_v17 = vpack.c.bf16 %v1223_v50, %v1222_v48 }
 0x416   :  { %v1230_v1 = vpack.c.bf16 %v1221_v54, %v1220_v52  ;;  %v2896_v54 = vmov 0.0|0.0  }
 0x417   :  { %2499 = vmatprep.subr.bf16.mxu0 %v2896_v54 }
 0x418   :  { %2408 = vmatprep.mubr.bf16.mxu0 %v1230_v1  ;;  %v2586_v1 = vld [vmem:[%s4178_s13 + $0x10] sm:$0xff]  }
 0x419   :  { %2409 = vmatmul.mubr.bf16.gmra.mrb[44].mxu0 %v1231_v17  ;;  %v2585_v17 = vld [vmem:[%s4178_s13 + $0x8] sm:$0xff]  }
 0x4d3   :  { %v2398_v51 = vpop.f32.mrb[32].mxu0 }
 0x4d4   :  { %v1348_v15 = vadd.f32 %v2398_v51, %v3798_v42  ;;  %v1339_v61 = vpop.f32.mrb[33].mxu0  ;;  %v2590_v51 = vld [vmem:[%s4178_s13 + $0x30] sm:$0xff]  }
 0x4d5   :  { %v1340_v18 = vadd.f32 %v3798_v42, %v1339_v61  ;;  %v2399_v21 = vpop.f32.mrb[34].mxu0 }
 0x4d6   :  { %v1404_v25 = vadd.f32 %v1348_v15, %v3521_v33  ;;  %v1351_v28 = vadd.f32 %v2399_v21, %v3798_v42  ;;  %v1342_v5 = vpop.f32.mrb[35].mxu0  ;;  %v3905_v15 = vld [vmem:[%s4175_s10] ss:$0 sm:$0xff] }
 0x4d7   :  { %v1402_v0 = vadd.f32 %v1340_v18, %v3525_v58  ;;  %v1343_v62 = vadd.f32 %v3798_v42, %v1342_v5  ;;  %v3910_v18 = vld [vmem:[%s4176_s11] ss:$0 sm:$0xff] }
 0x4d8   :  { %1420 = vst [vmem:[%s4184_s19 + $0x10] sm:$0xff] %v1404_v25  ;;  %v1405_v8 = vadd.f32 %v1351_v28, %v3533_v47  ;;  %v3916_v28 = vld [vmem:[%s4177_s12] ss:$0 sm:$0xff] }
 0x4d9   :  { %1418 = vst [vmem:[%s4184_s19] sm:$0xff] %v1402_v0  ;;  %v1403_v39 = vadd.f32 %v1343_v62, %v3540_v19 }
 0x4da   :  { %1421 = vst [vmem:[%s4184_s19 + $0x18] sm:$0xff] %v1405_v8  ;;  %v1435_v33 = vpack.c.bf16 %v1405_v8, %v1404_v25 }
 0x4db   :  { %1419 = vst [vmem:[%s4184_s19 + $0x8] sm:$0xff] %v1403_v39  ;;  %v2402_v58 = vpop.f32.mrb[36].mxu0  ;;  %v1434_v44 = vpack.c.bf16 %v1403_v39, %v1402_v0 }
 0x4dc   :  { %v1364_v32 = vadd.f32 %v2402_v58, %v3798_v42  ;;  %v1355_v47 = vpop.f32.mrb[37].mxu0 }
 0x4dd   :  { %v1356_v43 = vadd.f32 %v3798_v42, %v1355_v47  ;;  %v2403_v45 = vpop.f32.mrb[38].mxu0  ;;  %2428 = vmatprep.mubr.bf16.mxu1 %v1434_v44 }
 0x4de   :  { %v1408_v19 = vadd.f32 %v1364_v32, %v3557_v9  ;;  %v1367_v10 = vadd.f32 %v2403_v45, %v3798_v42  ;;  %v1358_v13 = vpop.f32.mrb[39].mxu0  ;;  %2429 = vmatmul.mubr.bf16.vlgmr.msra.gmra.mrb[32].mxu1 %v1435_v33 }
 0x4df   :  { %v1406_v3 = vadd.f32 %v1356_v43, %v3561_v12  ;;  %v1359_v37 = vadd.f32 %v3798_v42, %v1358_v13 }
 0x4e0   :  { %1424 = vst [vmem:[%s4184_s19 + $0x30] sm:$0xff] %v1408_v19  ;;  %v1409_v20 = vadd.f32 %v1367_v10, %v3569_v16 }
 0x4e1   :  { %1422 = vst [vmem:[%s4184_s19 + $0x20] sm:$0xff] %v1406_v3  ;;  %v1407_v9 = vadd.f32 %v1359_v37, %v3576_v46 }
 0x4e2   :  { %1425 = vst [vmem:[%s4184_s19 + $0x38] sm:$0xff] %v1409_v20  ;;  %v1437_v36 = vpack.c.bf16 %v1409_v20, %v1408_v19 }
 0x4e3   :  { %1423 = vst [vmem:[%s4184_s19 + $0x28] sm:$0xff] %v1407_v9  ;;  %v1436_v12 = vpack.c.bf16 %v1407_v9, %v1406_v3 }
 0x4e4   :  { %v2406_v4 = vpop.f32.mrb[40].mxu0 }
 0x4e5   :  { %v1380_v11 = vadd.f32 %v2406_v4, %v3798_v42  ;;  %v1371_v16 = vpop.f32.mrb[41].mxu0  ;;  %2432 = vmatprep.mubr.bf16.mxu1 %v1436_v12 }
 0x4e6   :  { %v1372_v26 = vadd.f32 %v3798_v42, %v1371_v16  ;;  %v2407_v29 = vpop.f32.mrb[42].mxu0  ;;  %2433 = vmatmul.mubr.bf16.gmra.mrb[36].mxu1 %v1437_v36 }
 0x4e7   :  { %v1412_v46 = vadd.f32 %v1380_v11, %v3593_v55  ;;  %v1383_v24 = vadd.f32 %v2407_v29, %v3798_v42  ;;  %v1374_v56 = vpop.f32.mrb[43].mxu0 }
 0x4e8   :  { %v1410_v53 = vadd.f32 %v1372_v26, %v3597_v23  ;;  %v1375_v22 = vadd.f32 %v3798_v42, %v1374_v56 }
 0x4e9   :  { %1428 = vst [vmem:[%s4184_s19 + $0x50] sm:$0xff] %v1412_v46  ;;  %v1413_v2 = vadd.f32 %v1383_v24, %v3605_v27 }
 0x4ea   :  { %1426 = vst [vmem:[%s4184_s19 + $0x40] sm:$0xff] %v1410_v53  ;;  %v1411_v57 = vadd.f32 %v1375_v22, %v3612_v60 }
 0x4eb   :  { %1429 = vst [vmem:[%s4184_s19 + $0x58] sm:$0xff] %v1413_v2  ;;  %v1439_v55 = vpack.c.bf16 %v1413_v2, %v1412_v46 }
 0x4ec   :  { %1427 = vst [vmem:[%s4184_s19 + $0x48] sm:$0xff] %v1411_v57  ;;  %v2410_v23 = vpop.f32.mrb[44].mxu0  ;;  %v1438_v35 = vpack.c.bf16 %v1411_v57, %v1410_v53 }
 0x4ed   :  { %v1396_v30 = vadd.f32 %v2410_v23, %v3798_v42  ;;  %v1387_v27 = vpop.f32.mrb[45].mxu0 }
 0x4ee   :  { %v1388_v41 = vadd.f32 %v3798_v42, %v1387_v27  ;;  %v2411_v34 = vpop.f32.mrb[46].mxu0  ;;  %2436 = vmatprep.mubr.bf16.mxu1 %v1438_v35 }
 0x4ef   :  { %v1416_v60 = vadd.f32 %v1396_v30, %v3629_v38  ;;  %v1399_v40 = vadd.f32 %v2411_v34, %v3798_v42  ;;  %v1390_v7 = vpop.f32.mrb[47].mxu0  ;;  %2437 = vmatmul.mubr.bf16.gmra.mrb[40].mxu1 %v1439_v55 }
 0x4f0   :  { %v1414_v14 = vadd.f32 %v1388_v41, %v3633_v49  ;;  %v1391_v48 = vadd.f32 %v3798_v42, %v1390_v7  ;;  %v2589_v42 = vld [vmem:[%s4178_s13 + $0x28] sm:$0xff]  }
 0x4f1   :  { %1432 = vst [vmem:[%s4184_s19 + $0x70] sm:$0xff] %v1416_v60  ;;  %v1417_v50 = vadd.f32 %v1399_v40, %v3641_v63  ;;  %v2898_v63 = vmov 0.0  }
 0x4f2   :  { %1430 = vst [vmem:[%s4184_s19 + $0x60] sm:$0xff] %v1414_v14  ;;  %v1415_v38 = vadd.f32 %v1391_v48, %v3648_v6  ;;  %2476 = vmatprep.mubr.msk.f32.mxu0 %vm2897_vm0, %v2898_v63  ;;  %2479 = vmatprep.subr.bf16.mxu1 %v2898_v63  ;;  %v2584_v6 = vld [vmem:[%s4178_s13] sm:$0xff]  }
 0x4f3   :  { %1433 = vst [vmem:[%s4184_s19 + $0x78] sm:$0xff] %v1417_v50  ;;  %v1441_v52 = vpack.c.bf16 %v1417_v50, %v1416_v60  ;;  %2480 = vmatpush3.bf16.msra.mxu1 %v2584_v6 }
 0x4f4   :  { %1431 = vst [vmem:[%s4184_s19 + $0x68] sm:$0xff] %v1415_v38  ;;  %v1440_v49 = vpack.c.bf16 %v1415_v38, %v1414_v14  ;;  %2481 = vmatprep.subr.bf16.mxu1 %v2898_v63 }
 0x4f6   :  { %2440 = vmatprep.mubr.bf16.mxu1 %v1440_v49 }
 0x4f7   :  { %2441 = vmatmul.mubr.bf16.gmra.mrb[44].mxu1 %v1441_v52 }
 0x4f8   :  { %2495 = vmatprep.mubr.msk.bf16.mxu1 %vm2897_vm0, %v2898_v63  ;;  %2482 = vmatpush3.bf16.msra.mxu1 %v2585_v17 }
 0x4f9   :  { %2483 = vmatprep.subr.bf16.mxu1 %v2898_v63 }
 0x4fc   :  { %2484 = vmatpush3.bf16.msra.mxu1 %v2586_v1 }
 0x4fd   :  { %2485 = vmatprep.subr.bf16.mxu1 %v2898_v63 }
 0x500   :  { %2486 = vmatpush3.bf16.msra.mxu1 %v2587_v31 }
 0x501   :  { %2487 = vmatprep.subr.bf16.mxu1 %v2898_v63 }
 0x504   :  { %2488 = vmatpush3.bf16.msra.mxu1 %v2588_v59 }
 0x505   :  { %2489 = vmatprep.subr.bf16.mxu1 %v2898_v63 }
 0x508   :  { %2490 = vmatpush3.bf16.msra.mxu1 %v2589_v42 }
 0x509   :  { %2491 = vmatprep.subr.bf16.mxu1 %v2898_v63 }
 0x50c   :  { %2492 = vmatpush3.bf16.msra.mxu1 %v2590_v51 }
 0x50d   :  { %2493 = vmatprep.subr.bf16.mxu1 %v2898_v63 }
 0x5b1   :  { %v2430_v61 = vpop.f32.mrb[32].mxu1 }
 0x5b2   :  { %v1556_v21 = vadd.f32 %v2430_v61, %v3905_v15  ;;  %v1547_v25 = vpop.f32.mrb[33].mxu1 }
 0x5b3   :  { %v1548_v5 = vadd.f32 %v3905_v15, %v1547_v25  ;;  %v2431_v0 = vpop.f32.mrb[34].mxu1 }
 0x5b4   :  { %1612 = vst [vmem:[%s4185_s20 + $0x10] sm:$0xff] %v1556_v21  ;;  %v1635_v62 = vmul.f32 %v3910_v18, %v1556_v21  ;;  %v1559_v8 = vadd.f32 %v2431_v0, %v3905_v15  ;;  %v1550_v39 = vpop.f32.mrb[35].mxu1 }
 0x5b5   :  { %1610 = vst [vmem:[%s4185_s20] sm:$0xff] %v1548_v5  ;;  %v1633_v33 = vmul.f32 %v3910_v18, %v1548_v5  ;;  %v1551_v58 = vadd.f32 %v3905_v15, %v1550_v39 }
 0x5b6   :  { %v3930_v44 = vadd.f32 %v3916_v28, %v1635_v62  ;;  %1613 = vst [vmem:[%s4185_s20 + $0x18] sm:$0xff] %v1559_v8  ;;  %v1636_v32 = vmul.f32 %v3910_v18, %v1559_v8 }
 0x5b7   :  { %v3937_v47 = vadd.f32 %v3916_v28, %v1633_v33  ;;  %1611 = vst [vmem:[%s4185_s20 + $0x8] sm:$0xff] %v1551_v58  ;;  %v1634_v43 = vmul.f32 %v3910_v18, %v1551_v58 }
 0x5b8   :  { %v1674_v45 = vsub.f32 0.0, %v3930_v44  ;;  %v3945_v19 = vadd.f32 %v3916_v28, %v1636_v32 }
 0x5b9   :  { %v1672_v10 = vsub.f32 0.0, %v3937_v47  ;;  %v3949_v13 = vadd.f32 %v3916_v28, %v1634_v43  ;;  %v2434_v3 = vpop.f32.mrb[36].mxu1 }
 0x5ba   :  { %v1692_v37 = vmul.f32 1.442695, %v1674_v45  ;;  %v1675_v20 = vsub.f32 0.0, %v3945_v19  ;;  %v1572_v9 = vadd.f32 %v2434_v3, %v3905_v15  ;;  %v1563_v36 = vpop.f32.mrb[37].mxu1 }
 0x5bb   :  { %v1688_v12 = vmul.f32 1.442695, %v1672_v10  ;;  %v1673_v4 = vsub.f32 0.0, %v3949_v13  ;;  %v1564_v11 = vadd.f32 %v3905_v15, %v1563_v36  ;;  %v2435_v16 = vpop.f32.mrb[38].mxu1 }
 0x5bc   :  { %2784 = vpow2.f32 %v1692_v37  ;;  %v1694_v26 = vmul.f32 1.442695, %v1675_v20  ;;  %1616 = vst [vmem:[%s4185_s20 + $0x30] sm:$0xff] %v1572_v9  ;;  %v1639_v29 = vmul.f32 %v3910_v18, %v1572_v9  ;;  %v1575_v46 = vadd.f32 %v2435_v16, %v3905_v15  ;;  %v1566_v24 = vpop.f32.mrb[39].mxu1 }
 0x5bd   :  { %2786 = vpow2.f32 %v1688_v12  ;;  %v1690_v56 = vmul.f32 1.442695, %v1673_v4  ;;  %1614 = vst [vmem:[%s4185_s20 + $0x20] sm:$0xff] %v1564_v11  ;;  %v1637_v53 = vmul.f32 %v3910_v18, %v1564_v11  ;;  %v1567_v22 = vadd.f32 %v3905_v15, %v1566_v24 }
 0x5be   :  { %2788 = vpow2.f32 %v1694_v26  ;;  %v3966_v2 = vadd.f32 %v3916_v28, %v1639_v29  ;;  %1617 = vst [vmem:[%s4185_s20 + $0x38] sm:$0xff] %v1575_v46  ;;  %v1640_v57 = vmul.f32 %v3910_v18, %v1575_v46 }
 0x5bf   :  { %2790 = vpow2.f32 %v1690_v56  ;;  %v3973_v55 = vadd.f32 %v3916_v28, %v1637_v53  ;;  %1615 = vst [vmem:[%s4185_s20 + $0x28] sm:$0xff] %v1567_v22  ;;  %v1638_v23 = vmul.f32 %v3910_v18, %v1567_v22 }
 0x5c0   :  { %v1678_v35 = vsub.f32 0.0, %v3966_v2  ;;  %v3981_v30 = vadd.f32 %v3916_v28, %v1640_v57 }
 0x5c1   :  { %v1676_v27 = vsub.f32 0.0, %v3973_v55  ;;  %v3985_v41 = vadd.f32 %v3916_v28, %v1638_v23 }
 0x5c2   :  { %v1700_v34 = vmul.f32 1.442695, %v1678_v35  ;;  %v1679_v60 = vsub.f32 0.0, %v3981_v30  ;;  %v2438_v40 = vpop.f32.mrb[40].mxu1 }
 0x5c3   :  { %v1696_v7 = vmul.f32 1.442695, %v1676_v27  ;;  %v1677_v14 = vsub.f32 0.0, %v3985_v41  ;;  %v1588_v48 = vadd.f32 %v2438_v40, %v3905_v15  ;;  %v1579_v50 = vpop.f32.mrb[41].mxu1 }
 0x5c4   :  { %2792 = vpow2.f32 %v1700_v34  ;;  %v1702_v38 = vmul.f32 1.442695, %v1679_v60  ;;  %v1580_v52 = vadd.f32 %v3905_v15, %v1579_v50  ;;  %v2439_v49 = vpop.f32.mrb[42].mxu1 }
 0x5c5   :  { %2794 = vpow2.f32 %v1696_v7  ;;  %v1698_v63 = vmul.f32 1.442695, %v1677_v14  ;;  %1620 = vst [vmem:[%s4185_s20 + $0x50] sm:$0xff] %v1588_v48  ;;  %v1643_v6 = vmul.f32 %v3910_v18, %v1588_v48  ;;  %v1591_v17 = vadd.f32 %v2439_v49, %v3905_v15  ;;  %v1582_v1 = vpop.f32.mrb[43].mxu1 }
 0x5c6   :  { %v2785_v31 = vpop.eup %2784  ;;  %2796 = vpow2.f32 %v1702_v38  ;;  %1618 = vst [vmem:[%s4185_s20 + $0x40] sm:$0xff] %v1580_v52  ;;  %v1641_v59 = vmul.f32 %v3910_v18, %v1580_v52  ;;  %v1583_v42 = vadd.f32 %v3905_v15, %v1582_v1 }
 0x5c7   :  { %v2787_v51 = vpop.eup %2786  ;;  %v1722_v61 = vadd.f32 1.0, %v2785_v31  ;;  %2798 = vpow2.f32 %v1698_v63  ;;  %v4002_v21 = vadd.f32 %v3916_v28, %v1643_v6  ;;  %1621 = vst [vmem:[%s4185_s20 + $0x58] sm:$0xff] %v1591_v17  ;;  %v1644_v25 = vmul.f32 %v3910_v18, %v1591_v17 }
 0x5c8   :  { %v2789_v5 = vpop.eup %2788  ;;  %v1720_v0 = vadd.f32 1.0, %v2787_v51  ;;  %v4009_v62 = vadd.f32 %v3916_v28, %v1641_v59  ;;  %1619 = vst [vmem:[%s4185_s20 + $0x48] sm:$0xff] %v1583_v42  ;;  %v1642_v8 = vmul.f32 %v3910_v18, %v1583_v42 }
 0x5c9   :  { %v2791_v39 = vpop.eup %2790  ;;  %2800 = vrcp.f32 %v1722_v61  ;;  %v1723_v33 = vadd.f32 1.0, %v2789_v5  ;;  %v1682_v58 = vsub.f32 0.0, %v4002_v21  ;;  %v4017_v32 = vadd.f32 %v3916_v28, %v1644_v25 }
 0x5ca   :  { %2802 = vrcp.f32 %v1720_v0  ;;  %v1721_v43 = vadd.f32 1.0, %v2791_v39  ;;  %v1680_v45 = vsub.f32 0.0, %v4009_v62  ;;  %v4021_v10 = vadd.f32 %v3916_v28, %v1642_v8  ;;  %v2442_v3 = vpop.f32.mrb[44].mxu1 }
 0x5cb   :  { %2804 = vrcp.f32 %v1723_v33  ;;  %v1708_v37 = vmul.f32 1.442695, %v1682_v58  ;;  %v1683_v20 = vsub.f32 0.0, %v4017_v32  ;;  %v1604_v9 = vadd.f32 %v2442_v3, %v3905_v15  ;;  %v1595_v36 = vpop.f32.mrb[45].mxu1 }
 0x5cc   :  { %2806 = vrcp.f32 %v1721_v43  ;;  %v1704_v12 = vmul.f32 1.442695, %v1680_v45  ;;  %v1681_v4 = vsub.f32 0.0, %v4021_v10  ;;  %v1596_v11 = vadd.f32 %v3905_v15, %v1595_v36  ;;  %v2443_v16 = vpop.f32.mrb[46].mxu1 }
 0x5cd   :  { %2808 = vpow2.f32 %v1708_v37  ;;  %v1710_v26 = vmul.f32 1.442695, %v1683_v20  ;;  %1624 = vst [vmem:[%s4185_s20 + $0x70] sm:$0xff] %v1604_v9  ;;  %v1647_v29 = vmul.f32 %v3910_v18, %v1604_v9  ;;  %v1607_v46 = vadd.f32 %v2443_v16, %v3905_v15  ;;  %v1598_v24 = vpop.f32.mrb[47].mxu1 }
 0x5ce   :  { %v2793_v56 = vpop.eup %2792  ;;  %2810 = vpow2.f32 %v1704_v12  ;;  %v1706_v53 = vmul.f32 1.442695, %v1681_v4  ;;  %1622 = vst [vmem:[%s4185_s20 + $0x60] sm:$0xff] %v1596_v11  ;;  %v1645_v22 = vmul.f32 %v3910_v18, %v1596_v11  ;;  %v1599_v57 = vadd.f32 %v3905_v15, %v1598_v24 }
 0x5cf   :  { %v2795_v23 = vpop.eup %2794  ;;  %v1726_v35 = vadd.f32 1.0, %v2793_v56  ;;  %2812 = vpow2.f32 %v1710_v26  ;;  %v4038_v27 = vadd.f32 %v3916_v28, %v1647_v29  ;;  %1625 = vst [vmem:[%s4185_s20 + $0x78] sm:$0xff] %v1607_v46  ;;  %v1648_v34 = vmul.f32 %v3910_v18, %v1607_v46 }
 0x5d0   :  { %v2797_v60 = vpop.eup %2796  ;;  %v1724_v40 = vadd.f32 1.0, %v2795_v23  ;;  %2814 = vpow2.f32 %v1706_v53  ;;  %v4045_v7 = vadd.f32 %v3916_v28, %v1645_v22  ;;  %1623 = vst [vmem:[%s4185_s20 + $0x68] sm:$0xff] %v1599_v57  ;;  %v1646_v15 = vmul.f32 %v3910_v18, %v1599_v57 }
 0x5d1   :  { %v2799_v14 = vpop.eup %2798  ;;  %2816 = vrcp.f32 %v1726_v35  ;;  %v1727_v48 = vadd.f32 1.0, %v2797_v60  ;;  %v1686_v50 = vsub.f32 0.0, %v4038_v27  ;;  %v4053_v38 = vadd.f32 %v3916_v28, %v1648_v34 }
 0x5d2   :  { %2818 = vrcp.f32 %v1724_v40  ;;  %v1725_v52 = vadd.f32 1.0, %v2799_v14  ;;  %v1684_v49 = vsub.f32 0.0, %v4045_v7  ;;  %v4057_v63 = vadd.f32 %v3916_v28, %v1646_v15 }
 0x5d3   :  { %v2801_v6 = vpop.eup %2800  ;;  %2820 = vrcp.f32 %v1727_v48  ;;  %v1716_v17 = vmul.f32 1.442695, %v1686_v50  ;;  %v1687_v18 = vsub.f32 0.0, %v4053_v38 }
 0x5d4   :  { %v2803_v1 = vpop.eup %2802  ;;  %v1754_v31 = vmul.f32 %v2801_v6, %v3930_v44  ;;  %2822 = vrcp.f32 %v1725_v52  ;;  %v1712_v59 = vmul.f32 1.442695, %v1684_v49  ;;  %v1685_v42 = vsub.f32 0.0, %v4057_v63 }
 0x5d5   :  { %v2805_v51 = vpop.eup %2804  ;;  %v1752_v61 = vmul.f32 %v2803_v1, %v3937_v47  ;;  %2824 = vpow2.f32 %v1716_v17  ;;  %v1718_v25 = vmul.f32 1.442695, %v1687_v18 }
 0x5d6   :  { %v2807_v5 = vpop.eup %2806  ;;  %1770 = vst [vmem:[%s4186_s21 + $0x10] sm:$0xff] %v1754_v31  ;;  %v1755_v28 = vmul.f32 %v2805_v51, %v3945_v19  ;;  %2826 = vpow2.f32 %v1712_v59  ;;  %v1714_v0 = vmul.f32 1.442695, %v1685_v42 }
 0x5d7   :  { %v2809_v8 = vpop.eup %2808  ;;  %1768 = vst [vmem:[%s4186_s21] sm:$0xff] %v1752_v61  ;;  %v1753_v44 = vmul.f32 %v2807_v5, %v3949_v13  ;;  %2828 = vpow2.f32 %v1718_v25 }
 0x5d8   :  { %v2811_v47 = vpop.eup %2810  ;;  %1771 = vst [vmem:[%s4186_s21 + $0x18] sm:$0xff] %v1755_v28  ;;  %v1730_v39 = vadd.f32 1.0, %v2809_v8  ;;  %2830 = vpow2.f32 %v1714_v0  ;;  %v2503_v33 = vpack.c.bf16 %v1755_v28, %v1754_v31 }
 0x5d9   :  { %v2813_v58 = vpop.eup %2812  ;;  %1769 = vst [vmem:[%s4186_s21 + $0x8] sm:$0xff] %v1753_v44  ;;  %v1728_v19 = vadd.f32 1.0, %v2811_v47  ;;  %v2500_v43 = vpack.c.bf16 %v1753_v44, %v1752_v61 }
 0x5da   :  { %v2815_v45 = vpop.eup %2814  ;;  %2832 = vrcp.f32 %v1730_v39  ;;  %v1731_v3 = vadd.f32 1.0, %v2813_v58 }
 0x5db   :  { %v2817_v13 = vpop.eup %2816  ;;  %2834 = vrcp.f32 %v1728_v19  ;;  %v1729_v37 = vadd.f32 1.0, %v2815_v45  ;;  %2501 = vmatpush3.bf16.msra.mxu0 %v2500_v43 }
 0x5dc   :  { %v2819_v20 = vpop.eup %2818  ;;  %v1758_v9 = vmul.f32 %v2817_v13, %v3966_v2  ;;  %2836 = vrcp.f32 %v1731_v3  ;;  %2502 = vmatprep.subr.bf16.mxu0 %v2896_v54 }
 0x5dd   :  { %v2821_v36 = vpop.eup %2820  ;;  %v1756_v12 = vmul.f32 %v2819_v20, %v3973_v55  ;;  %2838 = vrcp.f32 %v1729_v37 }
 0x5de   :  { %v2823_v4 = vpop.eup %2822  ;;  %1774 = vst [vmem:[%s4186_s21 + $0x30] sm:$0xff] %v1758_v9  ;;  %v1759_v11 = vmul.f32 %v2821_v36, %v3981_v30 }
 0x5df   :  { %v2825_v16 = vpop.eup %2824  ;;  %1772 = vst [vmem:[%s4186_s21 + $0x20] sm:$0xff] %v1756_v12  ;;  %v1757_v2 = vmul.f32 %v2823_v4, %v3985_v41  ;;  %2504 = vmatpush3.bf16.msra.mxu0 %v2503_v33 }
 0x5e0   :  { %v2827_v26 = vpop.eup %2826  ;;  %1775 = vst [vmem:[%s4186_s21 + $0x38] sm:$0xff] %v1759_v11  ;;  %v1734_v55 = vadd.f32 1.0, %v2825_v16  ;;  %2505 = vmatprep.subr.bf16.mxu0 %v2896_v54  ;;  %v2509_v29 = vpack.c.bf16 %v1759_v11, %v1758_v9 }
 0x5e1   :  { %v2829_v46 = vpop.eup %2828  ;;  %1773 = vst [vmem:[%s4186_s21 + $0x28] sm:$0xff] %v1757_v2  ;;  %v1732_v30 = vadd.f32 1.0, %v2827_v26  ;;  %v2506_v24 = vpack.c.bf16 %v1757_v2, %v1756_v12 }
 0x5e2   :  { %v2831_v56 = vpop.eup %2830  ;;  %2840 = vrcp.f32 %v1734_v55  ;;  %v1735_v41 = vadd.f32 1.0, %v2829_v46 }
 0x5e3   :  { %2842 = vrcp.f32 %v1732_v30  ;;  %v1733_v53 = vadd.f32 1.0, %v2831_v56  ;;  %2507 = vmatpush3.bf16.msra.mxu0 %v2506_v24 }
 0x5e4   :  { %v2833_v22 = vpop.eup %2832  ;;  %2844 = vrcp.f32 %v1735_v41  ;;  %2508 = vmatprep.subr.bf16.mxu0 %v2896_v54 }
 0x5e5   :  { %v2835_v57 = vpop.eup %2834  ;;  %v1762_v23 = vmul.f32 %v2833_v22, %v4002_v21  ;;  %2846 = vrcp.f32 %v1733_v53 }
 0x5e6   :  { %v2837_v35 = vpop.eup %2836  ;;  %v1760_v34 = vmul.f32 %v2835_v57, %v4009_v62 }
 0x5e7   :  { %v2839_v60 = vpop.eup %2838  ;;  %1778 = vst [vmem:[%s4186_s21 + $0x50] sm:$0xff] %v1762_v23  ;;  %v1763_v40 = vmul.f32 %v2837_v35, %v4017_v32  ;;  %2510 = vmatpush3.bf16.msra.mxu0 %v2509_v29 }
 0x5e8   :  { %1776 = vst [vmem:[%s4186_s21 + $0x40] sm:$0xff] %v1760_v34  ;;  %v1761_v15 = vmul.f32 %v2839_v60, %v4021_v10  ;;  %2511 = vmatprep.subr.bf16.mxu0 %v2896_v54 }
 0x5e9   :  { %1779 = vst [vmem:[%s4186_s21 + $0x58] sm:$0xff] %v1763_v40  ;;  %v2515_v21 = vpack.c.bf16 %v1763_v40, %v1762_v23 }
 0x5ea   :  { %1777 = vst [vmem:[%s4186_s21 + $0x48] sm:$0xff] %v1761_v15  ;;  %v2512_v62 = vpack.c.bf16 %v1761_v15, %v1760_v34 }
 0x5ec   :  { %v2841_v32 = vpop.eup %2840  ;;  %2513 = vmatpush3.bf16.msra.mxu0 %v2512_v62 }
 0x5ed   :  { %v2843_v14 = vpop.eup %2842  ;;  %v1766_v48 = vmul.f32 %v2841_v32, %v4038_v27  ;;  %2514 = vmatprep.subr.bf16.mxu0 %v2896_v54 }
 0x5ee   :  { %v2845_v10 = vpop.eup %2844  ;;  %v1764_v50 = vmul.f32 %v2843_v14, %v4045_v7 }
 0x5ef   :  { %v2847_v52 = vpop.eup %2846  ;;  %1782 = vst [vmem:[%s4186_s21 + $0x70] sm:$0xff] %v1766_v48  ;;  %v1767_v49 = vmul.f32 %v2845_v10, %v4053_v38  ;;  %v1784_v38 = vld [vmem:[%s4180_s15] sm:$0x3] }
 0x5f0   :  { %1780 = vst [vmem:[%s4186_s21 + $0x60] sm:$0xff] %v1764_v50  ;;  %v1765_v6 = vmul.f32 %v2847_v52, %v4057_v63  ;;  %2516 = vmatpush3.bf16.msra.mxu0 %v2515_v21  ;;  %v2591_v63 = vld [vmem:[%s4178_s13 + $0x38] sm:$0xff]  }
 0x5f1   :  { %1783 = vst [vmem:[%s4186_s21 + $0x78] sm:$0xff] %v1767_v49  ;;  %2517 = vmatprep.subr.bf16.mxu0 %v2896_v54  ;;  %v2521_v27 = vpack.c.bf16 %v1767_v49, %v1766_v48  ;;  %2494 = vmatpush3.bf16.msra.mxu1 %v2591_v63 }
 0x5f2   :  { %1781 = vst [vmem:[%s4186_s21 + $0x68] sm:$0xff] %v1765_v6  ;;  %v2518_v7 = vpack.c.bf16 %v1765_v6, %v1764_v50  ;;  %s2899_s21 = smov [#allocation2]  }
 0x5f3   :  { %s1987_s26 = sshll.u32 %s2899_s21, 4  ;;  %s1988_s26 = int_to_ptr.vmem [resolvable:$true] %s1987_s26 }
 0x5f4   :  { %2519 = vmatpush3.bf16.msra.mxu0 %v2518_v7  ;;  %s2848_s29 = scalar_lea.vmem %s1988_s26, 32  ;;  %p2853_p1 = scmp.lt.s32.totalorder %s1988_s26, %s1988_s26 }
 0x5f5   :  { %2520 = vmatprep.subr.bf16.mxu0 %v2896_v54  ;;  %p2849_p0 = scmp.ne.s32.totalorder %s1988_s26, %s2848_s29  ;;  %p2854_p2 = scmp.lt.s32.totalorder %s2848_s29, %s2848_s29 }
 0x5f7   :  { %p2855_p3 = por %p2854_p2, %p2853_p1 }
 0x5f8   :  { %2522 = vmatpush3.bf16.msra.mxu0 %v2521_v27 }
 0x5f9   :  { %p2856_p4 = pnand %p2855_p3, %p2849_p0 }
 0x5fb   :  { %2477 = vmatmul.mubr.f32.vlgmr.msra.gmra.mrb[48].mxu0 %v1784_v38 }
 0x6ce   :  { %v1851_v17 = vpop.f32.mrb[48].mxu0 }
 0x6cf   :  { %v1856_v18 = vpack.c.bf16 %v1851_v17, %v1851_v17  ;;  %1855 = vst [vmem:[#allocation2] sm:$0x3] %v1851_v17  ;;  %v2478_v1 = vpop.f32.mrb[49].mxu0 }
 0x6d1   :  { %2496 = vmatmul.mubr.bf16.vlgmr.msra.gmra.mrb[48].mxu1 %v1856_v18 }
 0x6d2   :  { %2859 = shalt.err (!%p2856_p4)
}
 0x6d3   :  { %s2860_s13 = scalar_lea.hbm %s4187_s22, 32 }
 0x6d4   :  { %p2861_p5 = scmp.ne.s32.totalorder %s4187_s22, %s2860_s13  ;;  %p2864_p6 = scmp.lt.u32.totalorder %s2860_s13, %s4187_s22 }
 0x6d6   :  { %p2866_p7 = pnand %p2864_p6, %p2861_p5 }
 0x6d8   :  { %2869 = shalt.err (!%p2866_p7)
}
 0x6d9   :  { %1990 = dma.vmem_to_hbm [thread:$0]  %s1988_s26, 32, %s4187_s22, [#allocation3]   ;;  %v2121_v54 = vld [vmem:[%s4179_s14] ss:$0 sm:$0xff] }
 0x6da   :  { %s2900_s3 = smov [#allocation4]  }
 0x6db   :  { %s1997_s27 = sshll.u32 %s2900_s3, 4  ;;  %s1998_s27 = int_to_ptr.vmem [resolvable:$true] %s1997_s27 }
 0x6dc   :  { %s2870_s0 = scalar_lea.vmem %s1998_s27, 32  ;;  %p2875_p9 = scmp.lt.s32.totalorder %s1998_s27, %s1998_s27 }
 0x6dd   :  { %p2871_p8 = scmp.ne.s32.totalorder %s1998_s27, %s2870_s0  ;;  %p2876_p10 = scmp.lt.s32.totalorder %s2870_s0, %s2870_s0 }
 0x6df   :  { %p2877_p11 = por %p2876_p10, %p2875_p9 }
 0x6e1   :  { %p2878_p12 = pnand %p2877_p11, %p2871_p8 }
 0x7a4   :  { %v1962_v31 = vpop.f32.mrb[48].mxu1 }
 0x7a5   :  { %v1963_v59 = vadd.f32 %v2121_v54, %v1962_v31  ;;  %v2497_v42 = vpop.f32.mrb[49].mxu1 }
 0x7a6   :  { %v1965_v51 = vpop.f32.mrb[50].mxu1 }
 0x7a7   :  { %1968 = vst [vmem:[#allocation4] sm:$0x3] %v1963_v59  ;;  %v2498_v61 = vpop.f32.mrb[51].mxu1 }
 0x7a8   :  { %2881 = shalt.err (!%p2878_p12)
}
 0x7a9   :  { %s2882_s14 = scalar_lea.hbm %s4188_s23, 32 }
 0x7aa   :  { %p2883_p13 = scmp.ne.s32.totalorder %s4188_s23, %s2882_s14  ;;  %p2886_p0 = scmp.lt.u32.totalorder %s2882_s14, %s4188_s23 }
 0x7ac   :  { %p2888_p1 = pnand %p2886_p0, %p2883_p13 }
 0x7ae   :  { %2891 = shalt.err (!%p2888_p1)
}
 0x7af   :  { %2000 = dma.vmem_to_hbm [thread:$0]  %s1998_s27, 32, %s4188_s23, [#allocation5]  }
 0x7b0   :  { %2892 = dma.done.wait [#allocation3], 32  }
 0x7b1   :  { %2893 = vsyncadd [#allocation3], 4294967264 }
 0x7b2   :  { %2894 = dma.done.wait [#allocation5], 32  }
 0x7b3   :  { %2895 = vsyncadd [#allocation5], 4294967264 }
 0x7b4   :  { %2019 = vsyncpa [#allocation3], 1 }
 0x7b5   :  { %2020 = vsyncpa [#allocation5], 1 }

</bundles_post_ra>
